<compile_context>
chip_gen: v5e
topology: v5e:2x2
jax: 0.10.0
libtpu: 0.0.40
codegen_flags: <defaults>
</compile_context>

<pallas_src>
import jax
import jax.numpy as jnp
from jax.experimental import pallas as pl
from jax.experimental.pallas import tpu as pltpu

BN_EPS = 1e-5
HEAD_PAD = 128          # pad tiny class heads to one full 128-lane vreg width
NODE_CLASSES = 5
GRAPH_CLASSES = 3


# ----------------------------------------------------------------------------
# Fused forward kernel (single grid step, everything resident on-chip)
# ----------------------------------------------------------------------------
def _gnn_forward_kernel(
    x_ref, a_ref, p_ref,
    fc1_w, fc1_shift,
    s1_wl, s1_wr, s1_scale, s1_shift,
    s2_wl, s2_wr, s2_scale, s2_shift,
    s3_wl, s3_wr, s3_scale, s3_shift,
    fc2_w, fc2_scale, fc2_shift,
    fc3_w, fc3_scale, fc3_shift,
    fc5_w, fc5_shift,
    fc4_w, fc4_shift,
    node_out_ref, graph_out_ref,
):
    f32 = jnp.float32
    bf16 = jnp.bfloat16

    def mm(act_f32, w_ref):
        # bf16 MXU matmul with f32 accumulation.
        return jnp.dot(act_f32.astype(bf16), w_ref[...], preferred_element_type=f32)

    a_mean = a_ref[...]            # [N, N] bf16 (mean-aggregation operator)
    x = x_ref[...]                 # [N, Fin] bf16

    # fc1 -> ReLU (dropout = identity in eval mode)
    h = jnp.maximum(
        jnp.dot(x, fc1_w[...], preferred_element_type=f32) + fc1_shift[...], 0.0)

    def sage_bn_relu(h, wl_ref, wr_ref, scale_ref, shift_ref):
        hb = h.astype(bf16)
        # Mean of neighbor features via dense aggregation operator.
        agg = jnp.dot(a_mean, hb, preferred_element_type=f32)
        # SAGEConv = lin_l(agg) + lin_r(x): two accumulated matmuls, no concat.
        out = (jnp.dot(agg.astype(bf16), wl_ref[...], preferred_element_type=f32)
               + jnp.dot(hb, wr_ref[...], preferred_element_type=f32))
        # Folded bias+BatchNorm epilogue + ReLU, in f32.
        return jnp.maximum(out * scale_ref[...] + shift_ref[...], 0.0)

    h = sage_bn_relu(h, s1_wl, s1_wr, s1_scale, s1_shift)   # -> 256
    h = sage_bn_relu(h, s2_wl, s2_wr, s2_scale, s2_shift)   # -> 128
    h = sage_bn_relu(h, s3_wl, s3_wr, s3_scale, s3_shift)   # -> 64

    # fc2 -> bn4 -> ReLU
    h = jnp.maximum(mm(h, fc2_w) * fc2_scale[...] + fc2_shift[...], 0.0)

    # node head: fc3 -> bn5 -> ReLU -> fc5 (output padded to 128 lanes)
    node = jnp.maximum(mm(h, fc3_w) * fc3_scale[...] + fc3_shift[...], 0.0)
    node_out_ref[...] = mm(node, fc5_w) + fc5_shift[...]

    # graph head: global_mean_pool -> fc4 (output padded to 128 lanes)
    pooled = jnp.dot(p_ref[...], h.astype(bf16), preferred_element_type=f32)
    graph_out_ref[...] = mm(pooled, fc4_w) + fc4_shift[...]


# ----------------------------------------------------------------------------
# Deterministic parameter initialization (mirrors the module's __init__ shapes)
# ----------------------------------------------------------------------------
def _linear(key, fin, fout):
    kw, kb = jax.random.split(key)
    w = jax.random.normal(kw, (fin, fout), jnp.float32) * 0.05
    b = jax.random.normal(kb, (fout,), jnp.float32) * 0.01
    return w, b


def _sage(key, fin, fout):
    # SAGEConv: lin_l (mean-aggregated neighbors, with bias), lin_r (root, no bias)
    kl, kr, kb = jax.random.split(key, 3)
    w_l = jax.random.normal(kl, (fin, fout), jnp.float32) * 0.05
    w_r = jax.random.normal(kr, (fin, fout), jnp.float32) * 0.05
    b = jax.random.normal(kb, (fout,), jnp.float32) * 0.01
    return w_l, w_r, b


def _bn(key, f):
    k1, k2, k3, k4 = jax.random.split(key, 4)
    gamma = 1.0 + 0.1 * jax.random.normal(k1, (f,), jnp.float32)
    beta = 0.1 * jax.random.normal(k2, (f,), jnp.float32)
    running_mean = 0.1 * jax.random.normal(k3, (f,), jnp.float32)
    running_var = 0.5 + jax.random.uniform(k4, (f,), jnp.float32)
    return gamma, beta, running_mean, running_var


def init_params(key, num_node_features):
    keys = jax.random.split(key, 13)
    return {
        "fc1": _linear(keys[0], num_node_features, 128),
        "sage1": _sage(keys[1], 128, 256),
        "bn1": _bn(keys[2], 256),
        "sage2": _sage(keys[3], 256, 128),
        "bn2": _bn(keys[4], 128),
        "sage3": _sage(keys[5], 128, 64),
        "bn3": _bn(keys[6], 64),
        "fc2": _linear(keys[7], 64, 64),
        "bn4": _bn(keys[8], 64),
        "fc3": _linear(keys[9], 64, 128),
        "bn5": _bn(keys[10], 128),
        "fc4": _linear(keys[11], 64, 3),
        "fc5": _linear(keys[12], 128, 5),
    }


# ----------------------------------------------------------------------------
# Parameter packing: BN folding, bf16 weights, padded heads
# ----------------------------------------------------------------------------
def _fold_bn(bias, bn_params):
    """Fold eval-mode BatchNorm on top of a linear bias into (scale, shift)."""
    gamma, beta, mean, var = bn_params
    scale = gamma / jnp.sqrt(var + BN_EPS)
    shift = (bias - mean) * scale + beta
    return scale[None, :].astype(jnp.float32), shift[None, :].astype(jnp.float32)


def _pad_head(w, b, width=HEAD_PAD):
    """Zero-pad a tiny head (fc4/fc5) to a lane-dense 128-wide output."""
    fout = w.shape[1]
    w_p = jnp.zeros((w.shape[0], width), jnp.float32).at[:, :fout].set(w)
    b_p = jnp.zeros((width,), jnp.float32).at[:fout].set(b)
    return w_p.astype(jnp.bfloat16), b_p[None, :].astype(jnp.float32)


def _kernel_params(params):
    bf16 = jnp.bfloat16
    fc1_w, fc1_b = params["fc1"]
    out = [fc1_w.astype(bf16), fc1_b[None, :].astype(jnp.float32)]
    for sage_name, bn_name in (("sage1", "bn1"), ("sage2", "bn2"), ("sage3", "bn3")):
        w_l, w_r, b = params[sage_name]
        scale, shift = _fold_bn(b, params[bn_name])
        out += [w_l.astype(bf16), w_r.astype(bf16), scale, shift]
    fc2_w, fc2_b = params["fc2"]
    scale, shift = _fold_bn(fc2_b, params["bn4"])
    out += [fc2_w.astype(bf16), scale, shift]
    fc3_w, fc3_b = params["fc3"]
    scale, shift = _fold_bn(fc3_b, params["bn5"])
    out += [fc3_w.astype(bf16), scale, shift]
    w5, b5 = _pad_head(*params["fc5"])
    out += [w5, b5]
    w4, b4 = _pad_head(*params["fc4"])
    out += [w4, b4]
    return out


def _full_spec(shape):
    nd = len(shape)
    return pl.BlockSpec(shape, lambda i, _nd=nd: (0,) * _nd)


# ----------------------------------------------------------------------------
# Forward pass
# ----------------------------------------------------------------------------
def forward(params, x, edge_index, batch, num_graphs):
    n = x.shape[0]
    src, tgt = edge_index[0], edge_index[1]

    # Dense mean-aggregation operator: A[i, j] = (#edges j->i) / in_degree(i)
    # TODO(synk): for large sparse graphs replace the dense [N,N] operator with
    # a scalar-prefetch CSR gather/accumulate kernel (O(E) instead of O(N^2)).
    adj = jnp.zeros((n, n), jnp.float32).at[tgt, src].add(1.0)
    deg = adj.sum(axis=1, keepdims=True)
    a_mean = (adj / jnp.maximum(deg, 1.0)).astype(jnp.bfloat16)

    # Dense global_mean_pool operator: P[g, i] = (batch[i]==g) / |graph g|
    onehot = (batch[None, :] == jnp.arange(num_graphs)[:, None]).astype(jnp.float32)
    cnt = onehot.sum(axis=1, keepdims=True)
    p_pool = (onehot / jnp.maximum(cnt, 1.0)).astype(jnp.bfloat16)

    inputs = [x.astype(jnp.bfloat16), a_mean, p_pool] + _kernel_params(params)

    node_p, graph_p = pl.pallas_call(
        _gnn_forward_kernel,
        out_shape=(
            jax.ShapeDtypeStruct((n, HEAD_PAD), jnp.float32),
            jax.ShapeDtypeStruct((num_graphs, HEAD_PAD), jnp.float32),
        ),
        grid=(1,),
        in_specs=[_full_spec(a.shape) for a in inputs],
        out_specs=(
            _full_spec((n, HEAD_PAD)),
            _full_spec((num_graphs, HEAD_PAD)),
        ),
        compiler_params=pltpu.CompilerParams(
            dimension_semantics=("arbitrary",),
        ),
    )(*inputs)

    return node_p[:, :NODE_CLASSES], graph_p[:, :GRAPH_CLASSES]


if __name__ == "__main__":
    NUM_NODES = 64
    NUM_NODE_FEATURES = 16
    NUM_EDGES = 128
    NUM_GRAPHS = 2

    key = jax.random.PRNGKey(0)
    k_param, k_x, k_src, k_tgt = jax.random.split(key, 4)

    params = init_params(k_param, NUM_NODE_FEATURES)

    x = jax.random.normal(k_x, (NUM_NODES, NUM_NODE_FEATURES), jnp.float32)
    src = jax.random.randint(k_src, (NUM_EDGES,), 0, NUM_NODES, jnp.int32)
    tgt = jax.random.randint(k_tgt, (NUM_EDGES,), 0, NUM_NODES, jnp.int32)
    edge_index = jnp.stack([src, tgt], axis=0)            # [2, E]
    batch = jnp.concatenate(
        [jnp.zeros((NUM_NODES // 2,), jnp.int32),
         jnp.ones((NUM_NODES - NUM_NODES // 2,), jnp.int32)]
    )                                                     # [N] graph assignment

    node_out, graph_out = forward(params, x, edge_index, batch, NUM_GRAPHS)
    jax.block_until_ready((node_out, graph_out))

    assert node_out.shape == (NUM_NODES, NODE_CLASSES)
    assert graph_out.shape == (NUM_GRAPHS, GRAPH_CLASSES)
    # TODO(synk): training-mode dropout / batch-stat BatchNorm not implemented
    # (forward reproduces eval/inference semantics).
    print("KERNEL_OK")
</pallas_src>

<mosaic_0001>
module attributes {stable_mosaic.version = 11 : i64} {
  func.func @_gnn_forward_kernel(%arg0: i32, %arg1: memref<64x16xbf16, #tpu.memory_space<vmem>>, %arg2: memref<64x64xbf16, #tpu.memory_space<vmem>>, %arg3: memref<2x64xbf16, #tpu.memory_space<vmem>>, %arg4: memref<16x128xbf16, #tpu.memory_space<vmem>>, %arg5: memref<1x128xf32, #tpu.memory_space<vmem>>, %arg6: memref<128x256xbf16, #tpu.memory_space<vmem>>, %arg7: memref<128x256xbf16, #tpu.memory_space<vmem>>, %arg8: memref<1x256xf32, #tpu.memory_space<vmem>>, %arg9: memref<1x256xf32, #tpu.memory_space<vmem>>, %arg10: memref<256x128xbf16, #tpu.memory_space<vmem>>, %arg11: memref<256x128xbf16, #tpu.memory_space<vmem>>, %arg12: memref<1x128xf32, #tpu.memory_space<vmem>>, %arg13: memref<1x128xf32, #tpu.memory_space<vmem>>, %arg14: memref<128x64xbf16, #tpu.memory_space<vmem>>, %arg15: memref<128x64xbf16, #tpu.memory_space<vmem>>, %arg16: memref<1x64xf32, #tpu.memory_space<vmem>>, %arg17: memref<1x64xf32, #tpu.memory_space<vmem>>, %arg18: memref<64x64xbf16, #tpu.memory_space<vmem>>, %arg19: memref<1x64xf32, #tpu.memory_space<vmem>>, %arg20: memref<1x64xf32, #tpu.memory_space<vmem>>, %arg21: memref<64x128xbf16, #tpu.memory_space<vmem>>, %arg22: memref<1x128xf32, #tpu.memory_space<vmem>>, %arg23: memref<1x128xf32, #tpu.memory_space<vmem>>, %arg24: memref<128x128xbf16, #tpu.memory_space<vmem>>, %arg25: memref<1x128xf32, #tpu.memory_space<vmem>>, %arg26: memref<64x128xbf16, #tpu.memory_space<vmem>>, %arg27: memref<1x128xf32, #tpu.memory_space<vmem>>, %arg28: memref<64x128xf32, #tpu.memory_space<vmem>>, %arg29: memref<2x128xf32, #tpu.memory_space<vmem>>) attributes {dimension_semantics = [#tpu.dimension_semantics<arbitrary>], iteration_bounds = array<i64: 1>, scalar_prefetch = 0 : i64, scratch_operands = 0 : i64, tpu.core_type = #tpu.core_type<tc>, window_params = [{pipeline_mode = #tpu.pipeline_mode<synchronous>, transform_indices = @transform_0, window_bounds = array<i64: 64, 16>}, {pipeline_mode = #tpu.pipeline_mode<synchronous>, transform_indices = @transform_1, window_bounds = array<i64: 64, 64>}, {pipeline_mode = #tpu.pipeline_mode<synchronous>, transform_indices = @transform_2, window_bounds = array<i64: 2, 64>}, {pipeline_mode = #tpu.pipeline_mode<synchronous>, transform_indices = @transform_3, window_bounds = array<i64: 16, 128>}, {pipeline_mode = #tpu.pipeline_mode<synchronous>, transform_indices = @transform_4, window_bounds = array<i64: 1, 128>}, {pipeline_mode = #tpu.pipeline_mode<synchronous>, transform_indices = @transform_5, window_bounds = array<i64: 128, 256>}, {pipeline_mode = #tpu.pipeline_mode<synchronous>, transform_indices = @transform_6, window_bounds = array<i64: 128, 256>}, {pipeline_mode = #tpu.pipeline_mode<synchronous>, transform_indices = @transform_7, window_bounds = array<i64: 1, 256>}, {pipeline_mode = #tpu.pipeline_mode<synchronous>, transform_indices = @transform_8, window_bounds = array<i64: 1, 256>}, {pipeline_mode = #tpu.pipeline_mode<synchronous>, transform_indices = @transform_9, window_bounds = array<i64: 256, 128>}, {pipeline_mode = #tpu.pipeline_mode<synchronous>, transform_indices = @transform_10, window_bounds = array<i64: 256, 128>}, {pipeline_mode = #tpu.pipeline_mode<synchronous>, transform_indices = @transform_11, window_bounds = array<i64: 1, 128>}, {pipeline_mode = #tpu.pipeline_mode<synchronous>, transform_indices = @transform_12, window_bounds = array<i64: 1, 128>}, {pipeline_mode = #tpu.pipeline_mode<synchronous>, transform_indices = @transform_13, window_bounds = array<i64: 128, 64>}, {pipeline_mode = #tpu.pipeline_mode<synchronous>, transform_indices = @transform_14, window_bounds = array<i64: 128, 64>}, {pipeline_mode = #tpu.pipeline_mode<synchronous>, transform_indices = @transform_15, window_bounds = array<i64: 1, 64>}, {pipeline_mode = #tpu.pipeline_mode<synchronous>, transform_indices = @transform_16, window_bounds = array<i64: 1, 64>}, {pipeline_mode = #tpu.pipeline_mode<synchronous>, transform_indices = @transform_17, window_bounds = array<i64: 64, 64>}, {pipeline_mode = #tpu.pipeline_mode<synchronous>, transform_indices = @transform_18, window_bounds = array<i64: 1, 64>}, {pipeline_mode = #tpu.pipeline_mode<synchronous>, transform_indices = @transform_19, window_bounds = array<i64: 1, 64>}, {pipeline_mode = #tpu.pipeline_mode<synchronous>, transform_indices = @transform_20, window_bounds = array<i64: 64, 128>}, {pipeline_mode = #tpu.pipeline_mode<synchronous>, transform_indices = @transform_21, window_bounds = array<i64: 1, 128>}, {pipeline_mode = #tpu.pipeline_mode<synchronous>, transform_indices = @transform_22, window_bounds = array<i64: 1, 128>}, {pipeline_mode = #tpu.pipeline_mode<synchronous>, transform_indices = @transform_23, window_bounds = array<i64: 128, 128>}, {pipeline_mode = #tpu.pipeline_mode<synchronous>, transform_indices = @transform_24, window_bounds = array<i64: 1, 128>}, {pipeline_mode = #tpu.pipeline_mode<synchronous>, transform_indices = @transform_25, window_bounds = array<i64: 64, 128>}, {pipeline_mode = #tpu.pipeline_mode<synchronous>, transform_indices = @transform_26, window_bounds = array<i64: 1, 128>}, {pipeline_mode = #tpu.pipeline_mode<synchronous>, transform_indices = @transform_27, window_bounds = array<i64: 64, 128>}, {pipeline_mode = #tpu.pipeline_mode<synchronous>, transform_indices = @transform_28, window_bounds = array<i64: 2, 128>}]} {
    %c0 = arith.constant 0 : index
    %c0_0 = arith.constant 0 : index
    %0 = vector.load %arg2[%c0, %c0_0] : memref<64x64xbf16, #tpu.memory_space<vmem>>, vector<64x64xbf16>
    %c0_1 = arith.constant 0 : index
    %c0_2 = arith.constant 0 : index
    %1 = vector.load %arg1[%c0_1, %c0_2] : memref<64x16xbf16, #tpu.memory_space<vmem>>, vector<64x16xbf16>
    %c0_3 = arith.constant 0 : index
    %c0_4 = arith.constant 0 : index
    %2 = vector.load %arg4[%c0_3, %c0_4] : memref<16x128xbf16, #tpu.memory_space<vmem>>, vector<16x128xbf16>
    %cst = arith.constant dense<0.000000e+00> : vector<64x128xf32>
    %3 = tpu.matmul %1, %2, %cst {dimension_numbers = #tpu.dot_dimension_numbers<[1], [0], [0], [1], [0, 0, 1, 1], [], []>} : vector<64x16xbf16>, vector<16x128xbf16>, vector<64x128xf32> -> vector<64x128xf32>
    %c0_5 = arith.constant 0 : index
    %c0_6 = arith.constant 0 : index
    %4 = vector.load %arg5[%c0_5, %c0_6] : memref<1x128xf32, #tpu.memory_space<vmem>>, vector<1x128xf32>
    %5 = vector.broadcast %4 : vector<1x128xf32> to vector<64x128xf32>
    %6 = arith.addf %3, %5 : vector<64x128xf32>
    %cst_7 = arith.constant 0.000000e+00 : f32
    %7 = vector.broadcast %cst_7 : f32 to vector<64x128xf32>
    %8 = arith.maximumf %6, %7 : vector<64x128xf32>
    %9 = arith.truncf %8 : vector<64x128xf32> to vector<64x128xbf16>
    %cst_8 = arith.constant dense<0.000000e+00> : vector<64x128xf32>
    %10 = tpu.matmul %0, %9, %cst_8 {dimension_numbers = #tpu.dot_dimension_numbers<[1], [0], [0], [1], [0, 0, 1, 1], [], []>} : vector<64x64xbf16>, vector<64x128xbf16>, vector<64x128xf32> -> vector<64x128xf32>
    %11 = arith.truncf %10 : vector<64x128xf32> to vector<64x128xbf16>
    %c0_9 = arith.constant 0 : index
    %c0_10 = arith.constant 0 : index
    %12 = vector.load %arg6[%c0_9, %c0_10] : memref<128x256xbf16, #tpu.memory_space<vmem>>, vector<128x256xbf16>
    %cst_11 = arith.constant dense<0.000000e+00> : vector<64x256xf32>
    %13 = tpu.matmul %11, %12, %cst_11 {dimension_numbers = #tpu.dot_dimension_numbers<[1], [0], [0], [1], [0, 0, 1, 1], [], []>} : vector<64x128xbf16>, vector<128x256xbf16>, vector<64x256xf32> -> vector<64x256xf32>
    %c0_12 = arith.constant 0 : index
    %c0_13 = arith.constant 0 : index
    %14 = vector.load %arg7[%c0_12, %c0_13] : memref<128x256xbf16, #tpu.memory_space<vmem>>, vector<128x256xbf16>
    %cst_14 = arith.constant dense<0.000000e+00> : vector<64x256xf32>
    %15 = tpu.matmul %9, %14, %cst_14 {dimension_numbers = #tpu.dot_dimension_numbers<[1], [0], [0], [1], [0, 0, 1, 1], [], []>} : vector<64x128xbf16>, vector<128x256xbf16>, vector<64x256xf32> -> vector<64x256xf32>
    %16 = arith.addf %13, %15 : vector<64x256xf32>
    %c0_15 = arith.constant 0 : index
    %c0_16 = arith.constant 0 : index
    %17 = vector.load %arg8[%c0_15, %c0_16] : memref<1x256xf32, #tpu.memory_space<vmem>>, vector<1x256xf32>
    %18 = vector.broadcast %17 : vector<1x256xf32> to vector<64x256xf32>
    %19 = arith.mulf %16, %18 : vector<64x256xf32>
    %c0_17 = arith.constant 0 : index
    %c0_18 = arith.constant 0 : index
    %20 = vector.load %arg9[%c0_17, %c0_18] : memref<1x256xf32, #tpu.memory_space<vmem>>, vector<1x256xf32>
    %21 = vector.broadcast %20 : vector<1x256xf32> to vector<64x256xf32>
    %22 = arith.addf %19, %21 : vector<64x256xf32>
    %cst_19 = arith.constant 0.000000e+00 : f32
    %23 = vector.broadcast %cst_19 : f32 to vector<64x256xf32>
    %24 = arith.maximumf %22, %23 : vector<64x256xf32>
    %25 = arith.truncf %24 : vector<64x256xf32> to vector<64x256xbf16>
    %cst_20 = arith.constant dense<0.000000e+00> : vector<64x256xf32>
    %26 = tpu.matmul %0, %25, %cst_20 {dimension_numbers = #tpu.dot_dimension_numbers<[1], [0], [0], [1], [0, 0, 1, 1], [], []>} : vector<64x64xbf16>, vector<64x256xbf16>, vector<64x256xf32> -> vector<64x256xf32>
    %27 = arith.truncf %26 : vector<64x256xf32> to vector<64x256xbf16>
    %c0_21 = arith.constant 0 : index
    %c0_22 = arith.constant 0 : index
    %28 = vector.load %arg10[%c0_21, %c0_22] : memref<256x128xbf16, #tpu.memory_space<vmem>>, vector<256x128xbf16>
    %cst_23 = arith.constant dense<0.000000e+00> : vector<64x128xf32>
    %29 = tpu.matmul %27, %28, %cst_23 {dimension_numbers = #tpu.dot_dimension_numbers<[1], [0], [0], [1], [0, 0, 1, 1], [], []>} : vector<64x256xbf16>, vector<256x128xbf16>, vector<64x128xf32> -> vector<64x128xf32>
    %c0_24 = arith.constant 0 : index
    %c0_25 = arith.constant 0 : index
    %30 = vector.load %arg11[%c0_24, %c0_25] : memref<256x128xbf16, #tpu.memory_space<vmem>>, vector<256x128xbf16>
    %cst_26 = arith.constant dense<0.000000e+00> : vector<64x128xf32>
    %31 = tpu.matmul %25, %30, %cst_26 {dimension_numbers = #tpu.dot_dimension_numbers<[1], [0], [0], [1], [0, 0, 1, 1], [], []>} : vector<64x256xbf16>, vector<256x128xbf16>, vector<64x128xf32> -> vector<64x128xf32>
    %32 = arith.addf %29, %31 : vector<64x128xf32>
    %c0_27 = arith.constant 0 : index
    %c0_28 = arith.constant 0 : index
    %33 = vector.load %arg12[%c0_27, %c0_28] : memref<1x128xf32, #tpu.memory_space<vmem>>, vector<1x128xf32>
    %34 = vector.broadcast %33 : vector<1x128xf32> to vector<64x128xf32>
    %35 = arith.mulf %32, %34 : vector<64x128xf32>
    %c0_29 = arith.constant 0 : index
    %c0_30 = arith.constant 0 : index
    %36 = vector.load %arg13[%c0_29, %c0_30] : memref<1x128xf32, #tpu.memory_space<vmem>>, vector<1x128xf32>
    %37 = vector.broadcast %36 : vector<1x128xf32> to vector<64x128xf32>
    %38 = arith.addf %35, %37 : vector<64x128xf32>
    %cst_31 = arith.constant 0.000000e+00 : f32
    %39 = vector.broadcast %cst_31 : f32 to vector<64x128xf32>
    %40 = arith.maximumf %38, %39 : vector<64x128xf32>
    %41 = arith.truncf %40 : vector<64x128xf32> to vector<64x128xbf16>
    %cst_32 = arith.constant dense<0.000000e+00> : vector<64x128xf32>
    %42 = tpu.matmul %0, %41, %cst_32 {dimension_numbers = #tpu.dot_dimension_numbers<[1], [0], [0], [1], [0, 0, 1, 1], [], []>} : vector<64x64xbf16>, vector<64x128xbf16>, vector<64x128xf32> -> vector<64x128xf32>
    %43 = arith.truncf %42 : vector<64x128xf32> to vector<64x128xbf16>
    %c0_33 = arith.constant 0 : index
    %c0_34 = arith.constant 0 : index
    %44 = vector.load %arg14[%c0_33, %c0_34] : memref<128x64xbf16, #tpu.memory_space<vmem>>, vector<128x64xbf16>
    %cst_35 = arith.constant dense<0.000000e+00> : vector<64x64xf32>
    %45 = tpu.matmul %43, %44, %cst_35 {dimension_numbers = #tpu.dot_dimension_numbers<[1], [0], [0], [1], [0, 0, 1, 1], [], []>} : vector<64x128xbf16>, vector<128x64xbf16>, vector<64x64xf32> -> vector<64x64xf32>
    %c0_36 = arith.constant 0 : index
    %c0_37 = arith.constant 0 : index
    %46 = vector.load %arg15[%c0_36, %c0_37] : memref<128x64xbf16, #tpu.memory_space<vmem>>, vector<128x64xbf16>
    %cst_38 = arith.constant dense<0.000000e+00> : vector<64x64xf32>
    %47 = tpu.matmul %41, %46, %cst_38 {dimension_numbers = #tpu.dot_dimension_numbers<[1], [0], [0], [1], [0, 0, 1, 1], [], []>} : vector<64x128xbf16>, vector<128x64xbf16>, vector<64x64xf32> -> vector<64x64xf32>
    %48 = arith.addf %45, %47 : vector<64x64xf32>
    %c0_39 = arith.constant 0 : index
    %c0_40 = arith.constant 0 : index
    %49 = vector.load %arg16[%c0_39, %c0_40] : memref<1x64xf32, #tpu.memory_space<vmem>>, vector<1x64xf32>
    %50 = vector.broadcast %49 : vector<1x64xf32> to vector<64x64xf32>
    %51 = arith.mulf %48, %50 : vector<64x64xf32>
    %c0_41 = arith.constant 0 : index
    %c0_42 = arith.constant 0 : index
    %52 = vector.load %arg17[%c0_41, %c0_42] : memref<1x64xf32, #tpu.memory_space<vmem>>, vector<1x64xf32>
    %53 = vector.broadcast %52 : vector<1x64xf32> to vector<64x64xf32>
    %54 = arith.addf %51, %53 : vector<64x64xf32>
    %cst_43 = arith.constant 0.000000e+00 : f32
    %55 = vector.broadcast %cst_43 : f32 to vector<64x64xf32>
    %56 = arith.maximumf %54, %55 : vector<64x64xf32>
    %57 = arith.truncf %56 : vector<64x64xf32> to vector<64x64xbf16>
    %c0_44 = arith.constant 0 : index
    %c0_45 = arith.constant 0 : index
    %58 = vector.load %arg18[%c0_44, %c0_45] : memref<64x64xbf16, #tpu.memory_space<vmem>>, vector<64x64xbf16>
    %cst_46 = arith.constant dense<0.000000e+00> : vector<64x64xf32>
    %59 = tpu.matmul %57, %58, %cst_46 {dimension_numbers = #tpu.dot_dimension_numbers<[1], [0], [0], [1], [0, 0, 1, 1], [], []>} : vector<64x64xbf16>, vector<64x64xbf16>, vector<64x64xf32> -> vector<64x64xf32>
    %c0_47 = arith.constant 0 : index
    %c0_48 = arith.constant 0 : index
    %60 = vector.load %arg19[%c0_47, %c0_48] : memref<1x64xf32, #tpu.memory_space<vmem>>, vector<1x64xf32>
    %61 = vector.broadcast %60 : vector<1x64xf32> to vector<64x64xf32>
    %62 = arith.mulf %59, %61 : vector<64x64xf32>
    %c0_49 = arith.constant 0 : index
    %c0_50 = arith.constant 0 : index
    %63 = vector.load %arg20[%c0_49, %c0_50] : memref<1x64xf32, #tpu.memory_space<vmem>>, vector<1x64xf32>
    %64 = vector.broadcast %63 : vector<1x64xf32> to vector<64x64xf32>
    %65 = arith.addf %62, %64 : vector<64x64xf32>
    %cst_51 = arith.constant 0.000000e+00 : f32
    %66 = vector.broadcast %cst_51 : f32 to vector<64x64xf32>
    %67 = arith.maximumf %65, %66 : vector<64x64xf32>
    %68 = arith.truncf %67 : vector<64x64xf32> to vector<64x64xbf16>
    %c0_52 = arith.constant 0 : index
    %c0_53 = arith.constant 0 : index
    %69 = vector.load %arg21[%c0_52, %c0_53] : memref<64x128xbf16, #tpu.memory_space<vmem>>, vector<64x128xbf16>
    %cst_54 = arith.constant dense<0.000000e+00> : vector<64x128xf32>
    %70 = tpu.matmul %68, %69, %cst_54 {dimension_numbers = #tpu.dot_dimension_numbers<[1], [0], [0], [1], [0, 0, 1, 1], [], []>} : vector<64x64xbf16>, vector<64x128xbf16>, vector<64x128xf32> -> vector<64x128xf32>
    %c0_55 = arith.constant 0 : index
    %c0_56 = arith.constant 0 : index
    %71 = vector.load %arg22[%c0_55, %c0_56] : memref<1x128xf32, #tpu.memory_space<vmem>>, vector<1x128xf32>
    %72 = vector.broadcast %71 : vector<1x128xf32> to vector<64x128xf32>
    %73 = arith.mulf %70, %72 : vector<64x128xf32>
    %c0_57 = arith.constant 0 : index
    %c0_58 = arith.constant 0 : index
    %74 = vector.load %arg23[%c0_57, %c0_58] : memref<1x128xf32, #tpu.memory_space<vmem>>, vector<1x128xf32>
    %75 = vector.broadcast %74 : vector<1x128xf32> to vector<64x128xf32>
    %76 = arith.addf %73, %75 : vector<64x128xf32>
    %cst_59 = arith.constant 0.000000e+00 : f32
    %77 = vector.broadcast %cst_59 : f32 to vector<64x128xf32>
    %78 = arith.maximumf %76, %77 : vector<64x128xf32>
    %79 = arith.truncf %78 : vector<64x128xf32> to vector<64x128xbf16>
    %c0_60 = arith.constant 0 : index
    %c0_61 = arith.constant 0 : index
    %80 = vector.load %arg24[%c0_60, %c0_61] : memref<128x128xbf16, #tpu.memory_space<vmem>>, vector<128x128xbf16>
    %cst_62 = arith.constant dense<0.000000e+00> : vector<64x128xf32>
    %81 = tpu.matmul %79, %80, %cst_62 {dimension_numbers = #tpu.dot_dimension_numbers<[1], [0], [0], [1], [0, 0, 1, 1], [], []>} : vector<64x128xbf16>, vector<128x128xbf16>, vector<64x128xf32> -> vector<64x128xf32>
    %c0_63 = arith.constant 0 : index
    %c0_64 = arith.constant 0 : index
    %82 = vector.load %arg25[%c0_63, %c0_64] : memref<1x128xf32, #tpu.memory_space<vmem>>, vector<1x128xf32>
    %83 = vector.broadcast %82 : vector<1x128xf32> to vector<64x128xf32>
    %84 = arith.addf %81, %83 : vector<64x128xf32>
    %c0_65 = arith.constant 0 : index
    %c0_66 = arith.constant 0 : index
    %85 = vector.load %arg28[%c0_65, %c0_66] : memref<64x128xf32, #tpu.memory_space<vmem>>, vector<64x128xf32>
    tpu.vector_store %arg28[%c0_65, %c0_66], %84 {strides = array<i32>} : memref<64x128xf32, #tpu.memory_space<vmem>>, vector<64x128xf32>,
    %c0_67 = arith.constant 0 : index
    %c0_68 = arith.constant 0 : index
    %86 = vector.load %arg3[%c0_67, %c0_68] : memref<2x64xbf16, #tpu.memory_space<vmem>>, vector<2x64xbf16>
    %87 = arith.truncf %67 : vector<64x64xf32> to vector<64x64xbf16>
    %cst_69 = arith.constant dense<0.000000e+00> : vector<2x64xf32>
    %88 = tpu.matmul %86, %87, %cst_69 {dimension_numbers = #tpu.dot_dimension_numbers<[1], [0], [0], [1], [0, 0, 1, 1], [], []>} : vector<2x64xbf16>, vector<64x64xbf16>, vector<2x64xf32> -> vector<2x64xf32>
    %89 = arith.truncf %88 : vector<2x64xf32> to vector<2x64xbf16>
    %c0_70 = arith.constant 0 : index
    %c0_71 = arith.constant 0 : index
    %90 = vector.load %arg26[%c0_70, %c0_71] : memref<64x128xbf16, #tpu.memory_space<vmem>>, vector<64x128xbf16>
    %cst_72 = arith.constant dense<0.000000e+00> : vector<2x128xf32>
    %91 = tpu.matmul %89, %90, %cst_72 {dimension_numbers = #tpu.dot_dimension_numbers<[1], [0], [0], [1], [0, 0, 1, 1], [], []>} : vector<2x64xbf16>, vector<64x128xbf16>, vector<2x128xf32> -> vector<2x128xf32>
    %c0_73 = arith.constant 0 : index
    %c0_74 = arith.constant 0 : index
    %92 = vector.load %arg27[%c0_73, %c0_74] : memref<1x128xf32, #tpu.memory_space<vmem>>, vector<1x128xf32>
    %93 = vector.broadcast %92 : vector<1x128xf32> to vector<2x128xf32>
    %94 = arith.addf %91, %93 : vector<2x128xf32>
    %c0_75 = arith.constant 0 : index
    %c0_76 = arith.constant 0 : index
    %95 = vector.load %arg29[%c0_75, %c0_76] : memref<2x128xf32, #tpu.memory_space<vmem>>, vector<2x128xf32>
    tpu.vector_store %arg29[%c0_75, %c0_76], %94 {strides = array<i32>} : memref<2x128xf32, #tpu.memory_space<vmem>>, vector<2x128xf32>,
    return
  }
  func.func @transform_0(%arg0: i32) -> (i32, i32) {
    %c0_i32 = arith.constant 0 : i32
    %c0_i32_0 = arith.constant 0 : i32
    %c0_i32_1 = arith.constant 0 : i32
    return %c0_i32, %c0_i32_0 : i32, i32
  }
  func.func @transform_1(%arg0: i32) -> (i32, i32) {
    %c0_i32 = arith.constant 0 : i32
    %c0_i32_0 = arith.constant 0 : i32
    %c0_i32_1 = arith.constant 0 : i32
    return %c0_i32, %c0_i32_0 : i32, i32
  }
  func.func @transform_2(%arg0: i32) -> (i32, i32) {
    %c0_i32 = arith.constant 0 : i32
    %c0_i32_0 = arith.constant 0 : i32
    %c0_i32_1 = arith.constant 0 : i32
    return %c0_i32, %c0_i32_0 : i32, i32
  }
  func.func @transform_3(%arg0: i32) -> (i32, i32) {
    %c0_i32 = arith.constant 0 : i32
    %c0_i32_0 = arith.constant 0 : i32
    %c0_i32_1 = arith.constant 0 : i32
    return %c0_i32, %c0_i32_0 : i32, i32
  }
  func.func @transform_4(%arg0: i32) -> (i32, i32) {
    %c0_i32 = arith.constant 0 : i32
    %c0_i32_0 = arith.constant 0 : i32
    %c0_i32_1 = arith.constant 0 : i32
    return %c0_i32, %c0_i32_0 : i32, i32
  }
  func.func @transform_5(%arg0: i32) -> (i32, i32) {
    %c0_i32 = arith.constant 0 : i32
    %c0_i32_0 = arith.constant 0 : i32
    %c0_i32_1 = arith.constant 0 : i32
    return %c0_i32, %c0_i32_0 : i32, i32
  }
  func.func @transform_6(%arg0: i32) -> (i32, i32) {
    %c0_i32 = arith.constant 0 : i32
    %c0_i32_0 = arith.constant 0 : i32
    %c0_i32_1 = arith.constant 0 : i32
    return %c0_i32, %c0_i32_0 : i32, i32
  }
  func.func @transform_7(%arg0: i32) -> (i32, i32) {
    %c0_i32 = arith.constant 0 : i32
    %c0_i32_0 = arith.constant 0 : i32
    %c0_i32_1 = arith.constant 0 : i32
    return %c0_i32, %c0_i32_0 : i32, i32
  }
  func.func @transform_8(%arg0: i32) -> (i32, i32) {
    %c0_i32 = arith.constant 0 : i32
    %c0_i32_0 = arith.constant 0 : i32
    %c0_i32_1 = arith.constant 0 : i32
    return %c0_i32, %c0_i32_0 : i32, i32
  }
  func.func @transform_9(%arg0: i32) -> (i32, i32) {
    %c0_i32 = arith.constant 0 : i32
    %c0_i32_0 = arith.constant 0 : i32
    %c0_i32_1 = arith.constant 0 : i32
    return %c0_i32, %c0_i32_0 : i32, i32
  }
  func.func @transform_10(%arg0: i32) -> (i32, i32) {
    %c0_i32 = arith.constant 0 : i32
    %c0_i32_0 = arith.constant 0 : i32
    %c0_i32_1 = arith.constant 0 : i32
    return %c0_i32, %c0_i32_0 : i32, i32
  }
  func.func @transform_11(%arg0: i32) -> (i32, i32) {
    %c0_i32 = arith.constant 0 : i32
    %c0_i32_0 = arith.constant 0 : i32
    %c0_i32_1 = arith.constant 0 : i32
    return %c0_i32, %c0_i32_0 : i32, i32
  }
  func.func @transform_12(%arg0: i32) -> (i32, i32) {
    %c0_i32 = arith.constant 0 : i32
    %c0_i32_0 = arith.constant 0 : i32
    %c0_i32_1 = arith.constant 0 : i32
    return %c0_i32, %c0_i32_0 : i32, i32
  }
  func.func @transform_13(%arg0: i32) -> (i32, i32) {
    %c0_i32 = arith.constant 0 : i32
    %c0_i32_0 = arith.constant 0 : i32
    %c0_i32_1 = arith.constant 0 : i32
    return %c0_i32, %c0_i32_0 : i32, i32
  }
  func.func @transform_14(%arg0: i32) -> (i32, i32) {
    %c0_i32 = arith.constant 0 : i32
    %c0_i32_0 = arith.constant 0 : i32
    %c0_i32_1 = arith.constant 0 : i32
    return %c0_i32, %c0_i32_0 : i32, i32
  }
  func.func @transform_15(%arg0: i32) -> (i32, i32) {
    %c0_i32 = arith.constant 0 : i32
    %c0_i32_0 = arith.constant 0 : i32
    %c0_i32_1 = arith.constant 0 : i32
    return %c0_i32, %c0_i32_0 : i32, i32
  }
  func.func @transform_16(%arg0: i32) -> (i32, i32) {
    %c0_i32 = arith.constant 0 : i32
    %c0_i32_0 = arith.constant 0 : i32
    %c0_i32_1 = arith.constant 0 : i32
    return %c0_i32, %c0_i32_0 : i32, i32
  }
  func.func @transform_17(%arg0: i32) -> (i32, i32) {
    %c0_i32 = arith.constant 0 : i32
    %c0_i32_0 = arith.constant 0 : i32
    %c0_i32_1 = arith.constant 0 : i32
    return %c0_i32, %c0_i32_0 : i32, i32
  }
  func.func @transform_18(%arg0: i32) -> (i32, i32) {
    %c0_i32 = arith.constant 0 : i32
    %c0_i32_0 = arith.constant 0 : i32
    %c0_i32_1 = arith.constant 0 : i32
    return %c0_i32, %c0_i32_0 : i32, i32
  }
  func.func @transform_19(%arg0: i32) -> (i32, i32) {
    %c0_i32 = arith.constant 0 : i32
    %c0_i32_0 = arith.constant 0 : i32
    %c0_i32_1 = arith.constant 0 : i32
    return %c0_i32, %c0_i32_0 : i32, i32
  }
  func.func @transform_20(%arg0: i32) -> (i32, i32) {
    %c0_i32 = arith.constant 0 : i32
    %c0_i32_0 = arith.constant 0 : i32
    %c0_i32_1 = arith.constant 0 : i32
    return %c0_i32, %c0_i32_0 : i32, i32
  }
  func.func @transform_21(%arg0: i32) -> (i32, i32) {
    %c0_i32 = arith.constant 0 : i32
    %c0_i32_0 = arith.constant 0 : i32
    %c0_i32_1 = arith.constant 0 : i32
    return %c0_i32, %c0_i32_0 : i32, i32
  }
  func.func @transform_22(%arg0: i32) -> (i32, i32) {
    %c0_i32 = arith.constant 0 : i32
    %c0_i32_0 = arith.constant 0 : i32
    %c0_i32_1 = arith.constant 0 : i32
    return %c0_i32, %c0_i32_0 : i32, i32
  }
  func.func @transform_23(%arg0: i32) -> (i32, i32) {
    %c0_i32 = arith.constant 0 : i32
    %c0_i32_0 = arith.constant 0 : i32
    %c0_i32_1 = arith.constant 0 : i32
    return %c0_i32, %c0_i32_0 : i32, i32
  }
  func.func @transform_24(%arg0: i32) -> (i32, i32) {
    %c0_i32 = arith.constant 0 : i32
    %c0_i32_0 = arith.constant 0 : i32
    %c0_i32_1 = arith.constant 0 : i32
    return %c0_i32, %c0_i32_0 : i32, i32
  }
  func.func @transform_25(%arg0: i32) -> (i32, i32) {
    %c0_i32 = arith.constant 0 : i32
    %c0_i32_0 = arith.constant 0 : i32
    %c0_i32_1 = arith.constant 0 : i32
    return %c0_i32, %c0_i32_0 : i32, i32
  }
  func.func @transform_26(%arg0: i32) -> (i32, i32) {
    %c0_i32 = arith.constant 0 : i32
    %c0_i32_0 = arith.constant 0 : i32
    %c0_i32_1 = arith.constant 0 : i32
    return %c0_i32, %c0_i32_0 : i32, i32
  }
  func.func @transform_27(%arg0: i32) -> (i32, i32) {
    %c0_i32 = arith.constant 0 : i32
    %c0_i32_0 = arith.constant 0 : i32
    %c0_i32_1 = arith.constant 0 : i32
    return %c0_i32, %c0_i32_0 : i32, i32
  }
  func.func @transform_28(%arg0: i32) -> (i32, i32) {
    %c0_i32 = arith.constant 0 : i32
    %c0_i32_0 = arith.constant 0 : i32
    %c0_i32_1 = arith.constant 0 : i32
    return %c0_i32, %c0_i32_0 : i32, i32
  }
}

</mosaic_0001>

<bundles_post_ra>
// kernel: tpu_custom_call.1
= control target key start
LH: loop header
LB: loop body
LE: loop exit
PB: predicated region body
PF: predicated region fallthrough
CT: control target
= control target key end

     0   :  { %s3298_s0 = inlined_call_operand.vmem [shape: bf16[64,16], index: 0, kind: input, shape index: {}]   ;;  %s3299_s1 = inlined_call_operand.vmem [shape: bf16[64,64], index: 1, kind: input, shape index: {}]   ;;  %s3300_s2 = inlined_call_operand.vmem [shape: bf16[2,64], index: 2, kind: input, shape index: {}]   ;;  %s3301_s3 = inlined_call_operand.vmem [shape: bf16[16,128], index: 3, kind: input, shape index: {}]   ;;  %s3302_s4 = inlined_call_operand.vmem [shape: f32[1,128], index: 4, kind: input, shape index: {}]   ;;  %s3303_s5 = inlined_call_operand.vmem [shape: bf16[128,256], index: 5, kind: input, shape index: {}]   ;;  %s3304_s6 = inlined_call_operand.hbm [shape: bf16[128,256], index: 6, kind: input, shape index: {}]   ;;  %s3305_s7 = inlined_call_operand.vmem [shape: f32[1,256], index: 7, kind: input, shape index: {}]   ;;  %s3306_s8 = inlined_call_operand.vmem [shape: f32[1,256], index: 8, kind: input, shape index: {}]   ;;  %s3307_s9 = inlined_call_operand.hbm [shape: bf16[256,128], index: 9, kind: input, shape index: {}]   ;;  %s3308_s10 = inlined_call_operand.hbm [shape: bf16[256,128], index: 10, kind: input, shape index: {}]   ;;  %s3309_s11 = inlined_call_operand.vmem [shape: f32[1,128], index: 11, kind: input, shape index: {}]   ;;  %s3310_s12 = inlined_call_operand.vmem [shape: f32[1,128], index: 12, kind: input, shape index: {}]   ;;  %s3311_s13 = inlined_call_operand.vmem [shape: bf16[128,64], index: 13, kind: input, shape index: {}]   ;;  %s3312_s14 = inlined_call_operand.vmem [shape: bf16[128,64], index: 14, kind: input, shape index: {}]   ;;  %s3313_s15 = inlined_call_operand.vmem [shape: f32[1,64], index: 15, kind: input, shape index: {}]   ;;  %s3314_s16 = inlined_call_operand.vmem [shape: f32[1,64], index: 16, kind: input, shape index: {}]   ;;  %s3315_s17 = inlined_call_operand.hbm [shape: bf16[64,64], index: 17, kind: input, shape index: {}]   ;;  %s3316_s18 = inlined_call_operand.vmem [shape: f32[1,64], index: 18, kind: input, shape index: {}]   ;;  %s3317_s19 = inlined_call_operand.vmem [shape: f32[1,64], index: 19, kind: input, shape index: {}]   ;;  %s3318_s20 = inlined_call_operand.hbm [shape: bf16[64,128], index: 20, kind: input, shape index: {}]   ;;  %s3319_s21 = inlined_call_operand.vmem [shape: f32[1,128], index: 21, kind: input, shape index: {}]   ;;  %s3320_s22 = inlined_call_operand.vmem [shape: f32[1,128], index: 22, kind: input, shape index: {}]   ;;  %s3321_s23 = inlined_call_operand.hbm [shape: bf16[128,128], index: 23, kind: input, shape index: {}]   ;;  %s3322_s24 = inlined_call_operand.vmem [shape: f32[1,128], index: 24, kind: input, shape index: {}]   ;;  %s3323_s25 = inlined_call_operand.hbm [shape: bf16[64,128], index: 25, kind: input, shape index: {}]   ;;  %s3324_s26 = inlined_call_operand.vmem [shape: f32[1,128], index: 26, kind: input, shape index: {}]   ;;  %s3325_s27 = inlined_call_operand.hbm [shape: f32[64,128], index: 27, kind: output, shape index: {0}]   ;;  %s3326_s28 = inlined_call_operand.hbm [shape: f32[2,128], index: 28, kind: output, shape index: {1}]  }
   0x1   :  { %3330 = sst [smem:[#allocation23_spill]] %s3298_s0 }
   0x2   :  { %3331 = sst [smem:[#allocation24_spill]] %s3299_s1 }
   0x3   :  { %3332 = sst [smem:[#allocation25_spill]] %s3300_s2 }
   0x4   :  { %3333 = sst [smem:[#allocation26_spill]] %s3301_s3 }
   0x5   :  { %3334 = sst [smem:[#allocation27_spill]] %s3302_s4 }
   0x6   :  { %3335 = sst [smem:[#allocation28_spill]] %s3303_s5 }
   0x7   :  { %3336 = sst [smem:[#allocation29_spill]] %s3304_s6 }
   0x8   :  { %3337 = sst [smem:[#allocation30_spill]] %s3305_s7 }
   0x9   :  { %3338 = sst [smem:[#allocation31_spill]] %s3306_s8 }
   0xa   :  { %3339 = sst [smem:[#allocation32_spill]] %s3307_s9 }
   0xb   :  { %3340 = sst [smem:[#allocation33_spill]] %s3308_s10 }
   0xc   :  { %3341 = sst [smem:[#allocation34_spill]] %s3309_s11 }
   0xd   :  { %3342 = sst [smem:[#allocation35_spill]] %s3310_s12 }
   0xe   :  { %34 = vsyncpa [#allocation3], 0 }
   0xf   :  { %35 = vsyncpa [#allocation6], 0 }
  0x10   :  { %36 = vsyncpa [#allocation9], 0 }
  0x11   :  { %37 = vsyncpa [#allocation12], 0 }
  0x12   :  { %38 = vsyncpa [#allocation4], 0  ;;  %s3343_s9 = sld [smem:[#allocation32_spill]] }
  0x18   :  { %s73_s30 = sshll.u32 %s3343_s9, 4  ;;  %s74_s30 = int_to_ptr.hbm [resolvable:$true] %s73_s30 }
  0x19   :  { %39 = vsyncpa [#allocation16], 0  ;;  %s2736_s3 = smov [#allocation5]   ;;  %s111_s11 = sshll.u32 %s3315_s17, 4  ;;  %s112_s11 = int_to_ptr.hbm [resolvable:$true] %s111_s11 }
  0x1a   :  { %s75_s6 = sshll.u32 %s2736_s3, 4  ;;  %s2737_s29 = smov 64   ;;  %s76_s6 = int_to_ptr.vmem [resolvable:$true] %s75_s6 }
  0x1b   :  { %s2738_s2 = smov 4   ;;  %s2739_s7 = smov [#allocation8]  }
  0x1c   :  { %81 = dma.hbm_to_vmem [thread:$0]  %s74_s30, 2048, %s76_s6, [#allocation6], %s2737_s29, %s2737_s29, %s2738_s2  }
  0x1d   :  { %s113_s12 = sshll.u32 %s2739_s7, 4  ;;  %s145_s8 = sshll.u32 %s3321_s23, 4  ;;  %s114_s12 = int_to_ptr.vmem [resolvable:$true] %s113_s12  ;;  %s146_s8 = int_to_ptr.hbm [resolvable:$true] %s145_s8 }
  0x1e   :  { %119 = dma.hbm_to_vmem [thread:$0]  %s112_s11, 512, %s114_s12, [#allocation9], %s2737_s29, %s2737_s29, %s2738_s2  }
  0x1f   :  { %s3344_s9 = sld [smem:[#allocation29_spill]]  ;;  %s2740_s10 = smov [#allocation11]  }
  0x20   :  { %s147_s0 = sshll.u32 %s2740_s10, 4  ;;  %s2741_s30 = smov [#allocation2]   ;;  %s148_s0 = int_to_ptr.vmem [resolvable:$true] %s147_s0 }
  0x21   :  { %153 = dma.hbm_to_vmem [thread:$0]  %s146_s8, 1024, %s148_s0, [#allocation12], %s2737_s29, %s2737_s29, %s2738_s2  }
  0x22   :  { %s58_s23 = sshll.u32 %s2741_s30, 4  ;;  %s2742_s6 = smov 128   ;;  %s59_s23 = int_to_ptr.vmem [resolvable:$true] %s58_s23 }
  0x23   :  { %s2743_s7 = smov 8   ;;  %s3345_s1 = sld [smem:[#allocation33_spill]] }
  0x24   :  { %s2744_s17 = smov [#allocation7]   ;;  %s128_s8 = sshll.u32 %s3318_s20, 4  ;;  %s129_s8 = int_to_ptr.hbm [resolvable:$true] %s128_s8 }
  0x25   :  { %s56_s3 = sshll.u32 %s3344_s9, 4  ;;  %s88_s5 = sshll.u32 %s2744_s17, 4  ;;  %s57_s3 = int_to_ptr.hbm [resolvable:$true] %s56_s3  ;;  %s89_s5 = int_to_ptr.vmem [resolvable:$true] %s88_s5 }
  0x26   :  { %64 = dma.hbm_to_vmem [thread:$0]  %s57_s3, 2048, %s59_s23, [#allocation3], %s2742_s6, %s2742_s6, %s2743_s7  }
  0x27   :  { %s2745_s0 = smov [#allocation10]   ;;  %s160_s11 = sshll.u32 %s3323_s25, 4  ;;  %s161_s11 = int_to_ptr.hbm [resolvable:$true] %s160_s11 }
  0x28   :  { %s130_s30 = sshll.u32 %s2745_s0, 4  ;;  %s2746_s12 = smov [#allocation13]   ;;  %s131_s30 = int_to_ptr.vmem [resolvable:$true] %s130_s30 }
  0x29   :  { %s86_s4 = sshll.u32 %s3345_s1, 4  ;;  %s162_s1 = sshll.u32 %s2746_s12, 4  ;;  %s87_s4 = int_to_ptr.hbm [resolvable:$true] %s86_s4  ;;  %s163_s1 = int_to_ptr.vmem [resolvable:$true] %s162_s1 }
  0x2a   :  { %94 = dma.hbm_to_vmem [thread:$0]  %s87_s4, 2048, %s89_s5, [#allocation6], %s2737_s29, %s2737_s29, %s2738_s2  }
  0x2b   :  { %136 = dma.hbm_to_vmem [thread:$0]  %s129_s8, 512, %s131_s30, [#allocation9], %s2737_s29, %s2737_s29, %s2738_s2  }
  0x2c   :  { %168 = dma.hbm_to_vmem [thread:$0]  %s161_s11, 512, %s163_s1, [#allocation12], %s2737_s29, %s2737_s29, %s2738_s2  }
  0x2d   :  { %2724 = dma.done.wait [#allocation3], 2048  }
  0x2e   :  { %2725 = vsyncadd [#allocation3], 4294965248 }
  0x2f   :  { %2726 = dma.done.wait [#allocation6], 4096  }
  0x30   :  { %2727 = vsyncadd [#allocation6], 4294963200 }
  0x31   :  { %2728 = dma.done.wait [#allocation9], 1024  }
  0x32   :  { %2729 = vsyncadd [#allocation9], 4294966272 }
  0x33   :  { %2730 = dma.done.wait [#allocation12], 1536  }
  0x34   :  { %2731 = vsyncadd [#allocation12], 4294965760  ;;  %s3346_s4 = sld [smem:[#allocation26_spill]]  ;;  %vm248_vm0 = vcmask 130048   ;;  %v2410_v3 = vld [vmem:[#allocation2 + $0x74] sm:$0xf] }
  0x35   :  { %s3347_s9 = sld [smem:[#allocation23_spill]]  ;;  %v2009_v4 = vld [vmem:[#allocation2 + $0x78] sm:$0xf0]  ;;  %v2408_v5 = vld [vmem:[#allocation2 + $0x64] sm:$0xf]  ;;  %vm322_vm1 = vcmask 523264  }
  0x36   :  { %v2012_v6 = vor.u32 %v2410_v3, %v2009_v4  ;;  %v2001_v7 = vld [vmem:[#allocation2 + $0x68] sm:$0xf0]  ;;  %v2406_v9 = vld [vmem:[#allocation2 + $0x54] sm:$0xf]  ;;  %v1993_v10 = vld [vmem:[#allocation2 + $0x58] sm:$0xf0] }
  0x37   :  { %v2004_v8 = vor.u32 %v2408_v5, %v2001_v7  ;;  %v1996_v11 = vor.u32 %v2406_v9, %v1993_v10  ;;  %v2404_v12 = vld [vmem:[#allocation2 + $0x44] sm:$0xf]  ;;  %v1985_v13 = vld [vmem:[#allocation2 + $0x48] sm:$0xf0]  ;;  %v2402_v17 = vld [vmem:[#allocation2 + $0x34] sm:$0xf] }
  0x38   :  { %509 = vmatpush.bf16.msra.mxu3 %v2012_v6  ;;  %v1988_v14 = vor.u32 %v2404_v12, %v1985_v13  ;;  %v1977_v18 = vld [vmem:[#allocation2 + $0x38] sm:$0xf0]  ;;  %v2400_v20 = vld [vmem:[#allocation2 + $0x24] sm:$0xf]  ;;  %v1969_v21 = vld [vmem:[#allocation2 + $0x28] sm:$0xf0] }
  0x39   :  { %v1980_v19 = vor.u32 %v2402_v17, %v1977_v18  ;;  %v1972_v22 = vor.u32 %v2400_v20, %v1969_v21  ;;  %v2398_v23 = vld [vmem:[#allocation2 + $0x14] sm:$0xf]  ;;  %v1961_v24 = vld [vmem:[#allocation2 + $0x18] sm:$0xf0]  ;;  %v2396_v26 = vld [vmem:[#allocation2 + $0x4] sm:$0xf] }
  0x3a   :  { %v2379_v0 = vld [vmem:[%s3346_s4] sm:$0xff]  ;;  %v1964_v25 = vor.u32 %v2398_v23, %v1961_v24  ;;  %v1953_v27 = vld [vmem:[#allocation2 + $0x8] sm:$0xf0]  ;;  %s3348_s11 = sld [smem:[#allocation27_spill]]  ;;  %v2007_v58 = vld [vmem:[#allocation2 + $0x70] sm:$0xf] }
  0x3b   :  { %v2375_v1 = vld [vmem:[%s3347_s9] sm:$0xff]  ;;  %268 = vmatpush.bf16.msra.mxu0 %v2379_v0  ;;  %v2376_v2 = vld [vmem:[%s3347_s9 + $0x8] sm:$0xff]  ;;  %v2377_v15 = vld [vmem:[%s3347_s9 + $0x10] sm:$0xff]  ;;  %v1956_v28 = vor.u32 %v2396_v26, %v1953_v27  ;;  %s3349_s20 = sld [smem:[#allocation24_spill]]  ;;  %s1873_s30 = sshll.u32 %s3325_s27, 4  ;;  %s1874_s30 = int_to_ptr.hbm [resolvable:$true] %s1873_s30 }
  0x3c   :  { %510 = vmatpush.bf16.msra.mxu3 %v2004_v8  ;;  %v2378_v16 = vld [vmem:[%s3347_s9 + $0x18] sm:$0xff]  ;;  %v1999_v61 = vld [vmem:[#allocation2 + $0x60] sm:$0xf]  ;;  %v2409_v62 = vld [vmem:[#allocation2 + $0x64] sm:$0xf0]  ;;  %s3350_s8 = sld [smem:[#allocation28_spill]] }
  0x3d   :  { %v2411_v59 = vld [vmem:[#allocation2 + $0x74] sm:$0xf0]  ;;  %v1983_v5 = vld [vmem:[#allocation2 + $0x40] sm:$0xf]  ;;  %v2405_v6 = vld [vmem:[#allocation2 + $0x44] sm:$0xf0] }
  0x3e   :  { %1925 = vmatmul.msk.bf16.vlgmr.msra.gmra.mxu0 %vm248_vm0, %v2375_v1  ;;  %v2008_v60 = vor.u32 %v2411_v59, %v2007_v58  ;;  %v2000_v1 = vor.u32 %v2409_v62, %v1999_v61  ;;  %v2407_v3 = vld [vmem:[#allocation2 + $0x54] sm:$0xf0]  ;;  %v1984_v7 = vor.u32 %v2405_v6, %v1983_v5  ;;  %v1975_v8 = vld [vmem:[#allocation2 + $0x30] sm:$0xf]  ;;  %v2401_v12 = vld [vmem:[#allocation2 + $0x24] sm:$0xf0] }
  0x3f   :  { %v2403_v9 = vld [vmem:[#allocation2 + $0x34] sm:$0xf0]  ;;  %v2397_v20 = vld [vmem:[#allocation2 + $0x4] sm:$0xf0]  ;;  %s3351_s10 = sld [smem:[#allocation30_spill]] }
  0x40   :  { %511 = vmatpush.bf16.msra.mxu3 %v1996_v11  ;;  %v2497_v30 = vld [vmem:[%s3348_s11] ss:$0 sm:$0xff]  ;;  %v1976_v10 = vor.u32 %v2403_v9, %v1975_v8  ;;  %v2399_v17 = vld [vmem:[#allocation2 + $0x14] sm:$0xf0]  ;;  %s3352_s3 = sld [smem:[#allocation31_spill]] }
  0x41   :  { %v2974_v63 = vld [vmem:[%s3349_s20] sm:$0xff]  ;;  %v2979_v0 = vld [vmem:[%s3349_s20 + $0x10] sm:$0xff]  ;;  %v2990_v13 = vld [vmem:[%s3349_s20 + $0x8] sm:$0xff]  ;;  %s3353_s11 = sld [smem:[#allocation34_spill]] }
  0x42   :  { %v1967_v11 = vld [vmem:[#allocation2 + $0x20] sm:$0xf]  ;;  %v2395_v23 = vld [vmem:[%s3350_s8 + $0x74] sm:$0xf0]  ;;  %v2394_v24 = vld [vmem:[%s3350_s8 + $0x74] sm:$0xf] }
  0x43   :  { %v2073_v26 = vld [vmem:[%s3350_s8 + $0x78] sm:$0xf0]  ;;  %v2023_v58 = vld [vmem:[%s3350_s8 + $0x10] sm:$0xf]  ;;  %v2383_v59 = vld [vmem:[%s3350_s8 + $0x14] sm:$0xf0] }
  0x44   :  { %512 = vmatpush.bf16.msra.mxu3 %v1988_v14  ;;  %v2995_v14 = vld [vmem:[%s3349_s20 + $0x18] sm:$0xff]  ;;  %v2076_v27 = vor.u32 %v2394_v24, %v2073_v26  ;;  %v2024_v61 = vor.u32 %v2383_v59, %v2023_v58  ;;  %v2017_v6 = vld [vmem:[%s3350_s8 + $0x8] sm:$0xf0]  ;;  %v2434_v24 = vld [vmem:[#allocation7 + $0x30] sm:$0xff]  ;;  %s3354_s1 = sld [smem:[#allocation35_spill]] }
  0x45   :  { %v2025_v62 = vld [vmem:[%s3350_s8 + $0x18] sm:$0xf0]  ;;  %v2433_v26 = vld [vmem:[#allocation7 + $0x28] sm:$0xff]  ;;  %s3355_s17 = sld [smem:[#allocation25_spill]] }
  0x48   :  { %513 = vmatpush.bf16.msra.mxu3 %v1980_v19  ;;  %v1951_v19 = vld [vmem:[#allocation2] sm:$0xf] }
  0x49   :  { %v1952_v21 = vor.u32 %v2397_v20, %v1951_v19 }
  0x4c   :  { %514 = vmatpush.bf16.msra.mxu3 %v1972_v22  ;;  %v2071_v22 = vld [vmem:[%s3350_s8 + $0x70] sm:$0xf] }
  0x4e   :  { %1926 = vmatmul.msk.bf16.gmra.mxu0 %vm248_vm0, %v2376_v2  ;;  %v1991_v2 = vld [vmem:[#allocation2 + $0x50] sm:$0xf] }
  0x4f   :  { %v1992_v4 = vor.u32 %v2407_v3, %v1991_v2  ;;  %v2015_v2 = vld [vmem:[%s3350_s8] sm:$0xf]  ;;  %v2381_v3 = vld [vmem:[%s3350_s8 + $0x4] sm:$0xf0] }
  0x50   :  { %515 = vmatpush.bf16.msra.mxu3 %v1964_v25  ;;  %v2072_v25 = vor.u32 %v2395_v23, %v2071_v22  ;;  %v2016_v5 = vor.u32 %v2381_v3, %v2015_v2  ;;  %v2435_v22 = vld [vmem:[#allocation7 + $0x38] sm:$0xff] }
  0x51   :  { %v2443_v23 = vld [vmem:[#allocation7 + $0x78] sm:$0xff] }
  0x52   :  { %618 = vmatpush.bf16.msrb.mxu0 %v2072_v25  ;;  %v2442_v25 = vld [vmem:[#allocation7 + $0x70] sm:$0xff] }
  0x54   :  { %516 = vmatpush.bf16.msra.mxu3 %v1956_v28  ;;  %v2063_v28 = vld [vmem:[%s3350_s8 + $0x60] sm:$0xf] }
  0x5e   :  { %1927 = vmatmul.msk.bf16.gmra.mxu0 %vm248_vm0, %v2377_v15  ;;  %v1968_v15 = vor.u32 %v2401_v12, %v1967_v11 }
  0x6e   :  { %1928 = vmatmul.msk.bf16.gmra.mxu0 %vm248_vm0, %v2378_v16  ;;  %v1959_v16 = vld [vmem:[#allocation2 + $0x10] sm:$0xf] }
  0x6f   :  { %v1960_v18 = vor.u32 %v2399_v17, %v1959_v16 }
  0xbb   :  { %v270_v29 = vpop.f32.mrf.mxu0 }
  0xbc   :  { %v271_v31 = vadd.f32 %v2497_v30, %v270_v29  ;;  %v2393_v29 = vld [vmem:[%s3350_s8 + $0x64] sm:$0xf0] }
  0xbe   :  { %v290_v34 = vmax.f32 %v271_v31, 0.0  ;;  %v2064_v31 = vor.u32 %v2393_v29, %v2063_v28  ;;  %v2432_v28 = vld [vmem:[#allocation7 + $0x20] sm:$0xff] }
  0xbf   :  { %v2440_v29 = vld [vmem:[#allocation7 + $0x60] sm:$0xff] }
  0xc0   :  { %619 = vmatpush.bf16.msrb.mxu0 %v2064_v31  ;;  %v2439_v31 = vld [vmem:[#allocation7 + $0x58] sm:$0xff] }
  0xc3   :  { %v272_v32 = vpop.f32.mrf.mxu0 }
  0xc4   :  { %v273_v33 = vadd.f32 %v2497_v30, %v272_v32  ;;  %v2065_v32 = vld [vmem:[%s3350_s8 + $0x68] sm:$0xf0] }
  0xc6   :  { %v291_v35 = vmax.f32 %v273_v33, 0.0  ;;  %v2055_v33 = vld [vmem:[%s3350_s8 + $0x50] sm:$0xf] }
  0xc8   :  { %v2958_v36 = vpack.c.bf16 %v291_v35, %v290_v34  ;;  %v2391_v34 = vld [vmem:[%s3350_s8 + $0x54] sm:$0xf0] }
  0xca   :  { %517 = vmatmul.bf16.vlgmr.msra.gmra.mxu3 %v2958_v36 }
  0xcb   :  { %v275_v37 = vpop.f32.mrf.mxu0 }
  0xcc   :  { %v276_v38 = vadd.f32 %v2497_v30, %v275_v37  ;;  %v2057_v37 = vld [vmem:[%s3350_s8 + $0x58] sm:$0xf0] }
  0xce   :  { %v292_v41 = vmax.f32 %v276_v38, 0.0  ;;  %v2056_v38 = vor.u32 %v2391_v34, %v2055_v33  ;;  %v2438_v33 = vld [vmem:[#allocation7 + $0x50] sm:$0xff]  ;;  %v2429_v34 = vld [vmem:[#allocation7 + $0x8] sm:$0xff] }
  0xd0   :  { %620 = vmatpush.bf16.msrb.mxu0 %v2056_v38 }
  0xd3   :  { %v277_v39 = vpop.f32.mrf.mxu0 }
  0xd4   :  { %v278_v40 = vadd.f32 %v2497_v30, %v277_v39 }
  0xd6   :  { %v293_v42 = vmax.f32 %v278_v40, 0.0  ;;  %v2047_v40 = vld [vmem:[%s3350_s8 + $0x40] sm:$0xf] }
  0xd8   :  { %v2961_v43 = vpack.c.bf16 %v293_v42, %v292_v41  ;;  %v2389_v41 = vld [vmem:[%s3350_s8 + $0x44] sm:$0xf0]  ;;  %v2388_v42 = vld [vmem:[%s3350_s8 + $0x44] sm:$0xf] }
  0xda   :  { %522 = vmatmul.bf16.gmra.mxu3 %v2961_v43 }
  0xdb   :  { %v280_v44 = vpop.f32.mrf.mxu0 }
  0xdc   :  { %v281_v45 = vadd.f32 %v2497_v30, %v280_v44  ;;  %v2049_v44 = vld [vmem:[%s3350_s8 + $0x48] sm:$0xf0] }
  0xde   :  { %v294_v48 = vmax.f32 %v281_v45, 0.0  ;;  %v2052_v45 = vor.u32 %v2388_v42, %v2049_v44 }
  0xe3   :  { %v282_v46 = vpop.f32.mrf.mxu0 }
  0xe4   :  { %v283_v47 = vadd.f32 %v2497_v30, %v282_v46  ;;  %v2039_v46 = vld [vmem:[%s3350_s8 + $0x30] sm:$0xf] }
  0xe6   :  { %v295_v49 = vmax.f32 %v283_v47, 0.0  ;;  %v2387_v47 = vld [vmem:[%s3350_s8 + $0x34] sm:$0xf0] }
  0xe8   :  { %v300_v50 = vpack.c.bf16 %v295_v49, %v294_v48  ;;  %v2386_v48 = vld [vmem:[%s3350_s8 + $0x34] sm:$0xf]  ;;  %v2040_v49 = vor.u32 %v2387_v47, %v2039_v46 }
  0xea   :  { %527 = vmatmul.bf16.gmra.mxu3 %v300_v50 }
  0xeb   :  { %v285_v51 = vpop.f32.mrf.mxu0 }
  0xec   :  { %v286_v52 = vadd.f32 %v2497_v30, %v285_v51 }
  0xee   :  { %v296_v55 = vmax.f32 %v286_v52, 0.0  ;;  %v2031_v52 = vld [vmem:[%s3350_s8 + $0x20] sm:$0xf] }
  0xf3   :  { %v287_v53 = vpop.f32.mrf.mxu0 }
  0xf4   :  { %v288_v54 = vadd.f32 %v2497_v30, %v287_v53  ;;  %v2392_v30 = vld [vmem:[%s3350_s8 + $0x64] sm:$0xf]  ;;  %v2385_v53 = vld [vmem:[%s3350_s8 + $0x24] sm:$0xf0] }
  0xf5   :  { %v2068_v35 = vor.u32 %v2392_v30, %v2065_v32  ;;  %v2431_v30 = vld [vmem:[#allocation7 + $0x18] sm:$0xff]  ;;  %v2430_v32 = vld [vmem:[#allocation7 + $0x10] sm:$0xff] }
  0xf6   :  { %v297_v56 = vmax.f32 %v288_v54, 0.0  ;;  %v2384_v54 = vld [vmem:[%s3350_s8 + $0x24] sm:$0xf] }
  0xf8   :  { %v2964_v57 = vpack.c.bf16 %v297_v56, %v296_v55  ;;  %v2032_v55 = vor.u32 %v2385_v53, %v2031_v52  ;;  %v2033_v56 = vld [vmem:[%s3350_s8 + $0x28] sm:$0xf0] }
  0xfa   :  { %339 = vmatpush.bf16.msra.mxu1 %v2964_v57  ;;  %2480 = vmatpush.bf16.msra.mxu2 %v2964_v57 }
  0xfb   :  { %532 = vmatmul.bf16.gmra.mxu3 %v2964_v57 }
  0xfe   :  { %340 = vmatpush.bf16.msra.mxu1 %v300_v50  ;;  %2481 = vmatpush.bf16.msra.mxu2 %v300_v50 }
 0x102   :  { %341 = vmatpush.bf16.msra.mxu1 %v2961_v43  ;;  %2482 = vmatpush.bf16.msra.mxu2 %v2961_v43 }
 0x106   :  { %342 = vmatpush.bf16.msra.mxu1 %v2958_v36  ;;  %2483 = vmatpush.bf16.msra.mxu2 %v2958_v36 }
 0x109   :  { %1945 = vmatmul.msk.bf16.vlgmr.msra.gmra.mxu1 %vm322_vm1, %v2974_v63  ;;  %1947 = vmatmul.msk.bf16.vlgmr.msra.gmra.mxu2 %vm322_vm1, %v2979_v0 }
 0x10a   :  { %480 = vmatpush.bf16.msrb.mxu2 %v2008_v60  ;;  %647 = vmatpush.bf16.msrb.mxu1 %v2076_v27  ;;  %v2382_v60 = vld [vmem:[%s3350_s8 + $0x14] sm:$0xf]  ;;  %v2441_v27 = vld [vmem:[#allocation7 + $0x68] sm:$0xff] }
 0x10e   :  { %481 = vmatpush.bf16.msrb.mxu2 %v2000_v1  ;;  %648 = vmatpush.bf16.msrb.mxu1 %v2068_v35  ;;  %v2028_v1 = vor.u32 %v2382_v60, %v2025_v62  ;;  %v2437_v35 = vld [vmem:[#allocation7 + $0x48] sm:$0xff] }
 0x112   :  { %482 = vmatpush.bf16.msrb.mxu2 %v1992_v4  ;;  %v2380_v4 = vld [vmem:[%s3350_s8 + $0x4] sm:$0xf] }
 0x116   :  { %483 = vmatpush.bf16.msrb.mxu2 %v1984_v7  ;;  %v2020_v7 = vor.u32 %v2380_v4, %v2017_v6 }
 0x119   :  { %1946 = vmatmul.msk.bf16.gmra.mxu1 %vm322_vm1, %v2990_v13  ;;  %1948 = vmatmul.msk.bf16.gmra.mxu2 %vm322_vm1, %v2995_v14 }
 0x11a   :  { %484 = vmatpush.bf16.msrb.mxu2 %v1976_v10 }
 0x11e   :  { %485 = vmatpush.bf16.msrb.mxu2 %v1968_v15 }
 0x122   :  { %486 = vmatpush.bf16.msrb.mxu2 %v1960_v18 }
 0x126   :  { %487 = vmatpush.bf16.msrb.mxu2 %v1952_v21 }
 0x129   :  { %488 = vmatmul.bf16.vlgmr.msrb.gmra.mxu2 %v2958_v36  ;;  %v2390_v36 = vld [vmem:[%s3350_s8 + $0x54] sm:$0xf] }
 0x12a   :  { %v2060_v39 = vor.u32 %v2390_v36, %v2057_v37  ;;  %v2428_v36 = vld [vmem:[#allocation7] sm:$0xff] }
 0x12b   :  { %v2436_v37 = vld [vmem:[#allocation7 + $0x40] sm:$0xff] }
 0x12c   :  { %649 = vmatpush.bf16.msrb.mxu1 %v2060_v39 }
 0x130   :  { %650 = vmatpush.bf16.msrb.mxu1 %v2052_v45 }
 0x139   :  { %493 = vmatmul.bf16.gmra.mxu2 %v2961_v43  ;;  %v2048_v43 = vor.u32 %v2389_v41, %v2047_v40 }
 0x13b   :  { %621 = vmatpush.bf16.msrb.mxu0 %v2048_v43  ;;  %v676_v43 = vld [vmem:[%s3351_s10] sm:$0x3] }
 0x13c   :  { %v3103_v46 = vperm.slane %v676_v43, 0 }
 0x13f   :  { %622 = vmatpush.bf16.msrb.mxu0 %v2040_v49  ;;  %v698_v49 = vld [vmem:[%s3352_s3] sm:$0x3] }
 0x140   :  { %v3111_v53 = vperm.slane %v698_v49, 0 }
 0x143   :  { %623 = vmatpush.bf16.msrb.mxu0 %v2032_v55  ;;  %v3114_v55 = vperm.slane %v698_v49, 1 }
 0x147   :  { %624 = vmatpush.bf16.msrb.mxu0 %v2024_v61 }
 0x149   :  { %498 = vmatmul.bf16.gmra.mxu2 %v300_v50  ;;  %v2041_v50 = vld [vmem:[%s3350_s8 + $0x38] sm:$0xf0] }
 0x14a   :  { %v2044_v51 = vor.u32 %v2386_v48, %v2041_v50  ;;  %v3105_v48 = vperm.slane %v676_v43, 1 }
 0x14b   :  { %625 = vmatpush.bf16.msrb.mxu0 %v2016_v5 }
 0x14c   :  { %651 = vmatpush.bf16.msrb.mxu1 %v2044_v51 }
 0x14d   :  { %v518_v38 = vpop.f32.mrf.mxu3 }
 0x14f   :  { %970 = vmatpush.bf16.msra.mxu0 %v2435_v22 }
 0x153   :  { %971 = vmatpush.bf16.msra.mxu0 %v2434_v24 }
 0x155   :  { %v520_v40 = vpop.f32.mrf.mxu3 }
 0x157   :  { %972 = vmatpush.bf16.msra.mxu0 %v2433_v26 }
 0x159   :  { %503 = vmatmul.bf16.gmra.mxu2 %v2964_v57  ;;  %v2036_v57 = vor.u32 %v2384_v54, %v2033_v56 }
 0x15b   :  { %652 = vmatpush.bf16.msrb.mxu1 %v2036_v57  ;;  %973 = vmatpush.bf16.msra.mxu0 %v2432_v28 }
 0x15d   :  { %v523_v50 = vpop.f32.mrf.mxu3 }
 0x15f   :  { %653 = vmatpush.bf16.msrb.mxu1 %v2028_v1  ;;  %974 = vmatpush.bf16.msra.mxu0 %v2431_v30 }
 0x163   :  { %654 = vmatpush.bf16.msrb.mxu1 %v2020_v7  ;;  %975 = vmatpush.bf16.msra.mxu0 %v2430_v32 }
 0x165   :  { %v525_v4 = vpop.f32.mrf.mxu3 }
 0x167   :  { %999 = vmatpush.bf16.msra.mxu1 %v2443_v23  ;;  %976 = vmatpush.bf16.msra.mxu0 %v2429_v34 }
 0x16b   :  { %1000 = vmatpush.bf16.msra.mxu1 %v2442_v25  ;;  %977 = vmatpush.bf16.msra.mxu0 %v2428_v36 }
 0x16d   :  { %v528_v22 = vpop.f32.mrf.mxu3 }
 0x16f   :  { %1001 = vmatpush.bf16.msra.mxu1 %v2441_v27 }
 0x173   :  { %1002 = vmatpush.bf16.msra.mxu1 %v2440_v29 }
 0x177   :  { %1003 = vmatpush.bf16.msra.mxu1 %v2439_v31 }
 0x17b   :  { %1004 = vmatpush.bf16.msra.mxu1 %v2438_v33 }
 0x17f   :  { %1005 = vmatpush.bf16.msra.mxu1 %v2437_v35 }
 0x183   :  { %1006 = vmatpush.bf16.msra.mxu1 %v2436_v37 }
 0x186   :  { %v344_v8 = vpop.f32.mrf.mxu1 }
 0x18c   :  { %v354_v16 = vpop.f32.mrf.mxu2 }
 0x18e   :  { %v346_v9 = vpop.f32.mrf.mxu1 }
 0x18f   :  { %v364_v10 = vpack.c.bf16 %v346_v9, %v344_v8 }
 0x191   :  { %626 = vmatmul.bf16.vlgmr.msrb.gmra.mxu0 %v364_v10  ;;  %655 = vmatmul.bf16.vlgmr.msrb.gmra.mxu1 %v364_v10 }
 0x194   :  { %v356_v17 = vpop.f32.mrf.mxu2 }
 0x195   :  { %v366_v18 = vpack.c.bf16 %v356_v17, %v354_v16 }
 0x196   :  { %v349_v11 = vpop.f32.mrf.mxu1 }
 0x19c   :  { %v359_v19 = vpop.f32.mrf.mxu2 }
 0x19e   :  { %v351_v12 = vpop.f32.mrf.mxu1 }
 0x19f   :  { %v365_v15 = vpack.c.bf16 %v351_v12, %v349_v11 }
 0x1a1   :  { %631 = vmatmul.bf16.gmra.mxu0 %v365_v15  ;;  %660 = vmatmul.bf16.gmra.mxu1 %v365_v15 }
 0x1a4   :  { %v361_v20 = vpop.f32.mrf.mxu2 }
 0x1a5   :  { %v367_v21 = vpack.c.bf16 %v361_v20, %v359_v19 }
 0x1ac   :  { %v489_v39 = vpop.f32.mrf.mxu2 }
 0x1b1   :  { %636 = vmatmul.bf16.gmra.mxu0 %v366_v18  ;;  %665 = vmatmul.bf16.gmra.mxu1 %v366_v18 }
 0x1b4   :  { %v491_v41 = vpop.f32.mrf.mxu2 }
 0x1bc   :  { %v494_v51 = vpop.f32.mrf.mxu2 }
 0x1c1   :  { %641 = vmatmul.bf16.gmra.mxu0 %v367_v21  ;;  %670 = vmatmul.bf16.gmra.mxu1 %v367_v21 }
 0x1c4   :  { %v496_v5 = vpop.f32.mrf.mxu2 }
 0x1cc   :  { %v499_v23 = vpop.f32.mrf.mxu2 }
 0x20e   :  { %v627_v42 = vpop.f32.mrf.mxu0  ;;  %v656_v44 = vpop.f32.mrf.mxu1 }
 0x20f   :  { %v628_v45 = vadd.f32 %v627_v42, %v489_v39  ;;  %v657_v47 = vadd.f32 %v656_v44, %v518_v38 }
 0x211   :  { %v682_v52 = vmul.f32 %v3103_v46, %v628_v45  ;;  %v683_v54 = vmul.f32 %v3105_v48, %v657_v47 }
 0x213   :  { %v704_v60 = vadd.f32 %v3111_v53, %v682_v52  ;;  %v705_v61 = vadd.f32 %v3114_v55, %v683_v54 }
 0x215   :  { %v720_v6 = vmax.f32 %v704_v60, 0.0  ;;  %v721_v7 = vmax.f32 %v705_v61, 0.0 }
 0x216   :  { %v629_v56 = vpop.f32.mrf.mxu0  ;;  %v658_v57 = vpop.f32.mrf.mxu1 }
 0x217   :  { %v630_v58 = vadd.f32 %v629_v56, %v491_v41  ;;  %v659_v59 = vadd.f32 %v658_v57, %v520_v40  ;;  %v530_v40 = vpop.f32.mrf.mxu3  ;;  %v501_v41 = vpop.f32.mrf.mxu2 }
 0x219   :  { %v684_v62 = vmul.f32 %v3103_v46, %v630_v58  ;;  %v685_v1 = vmul.f32 %v3105_v48, %v659_v59 }
 0x21b   :  { %v706_v2 = vadd.f32 %v3111_v53, %v684_v62  ;;  %v707_v3 = vadd.f32 %v3114_v55, %v685_v1 }
 0x21d   :  { %v722_v8 = vmax.f32 %v706_v2, 0.0  ;;  %v723_v9 = vmax.f32 %v707_v3, 0.0 }
 0x21e   :  { %v632_v10 = vpop.f32.mrf.mxu0  ;;  %v661_v11 = vpop.f32.mrf.mxu1 }
 0x21f   :  { %v3122_v12 = vpack.c.bf16 %v722_v8, %v720_v6  ;;  %v3124_v15 = vpack.c.bf16 %v723_v9, %v721_v7  ;;  %v633_v16 = vadd.f32 %v632_v10, %v494_v51  ;;  %v662_v17 = vadd.f32 %v661_v11, %v523_v50  ;;  %v533_v58 = vpop.f32.mrf.mxu3  ;;  %v504_v59 = vpop.f32.mrf.mxu2 }
 0x221   :  { %978 = vmatmul.bf16.vlgmr.msra.gmra.mxu0 %v3122_v12  ;;  %1007 = vmatmul.bf16.vlgmr.msra.gmra.mxu1 %v3124_v15  ;;  %v686_v18 = vmul.f32 %v3103_v46, %v633_v16  ;;  %v687_v19 = vmul.f32 %v3105_v48, %v662_v17 }
 0x223   :  { %v708_v28 = vadd.f32 %v3111_v53, %v686_v18  ;;  %v709_v29 = vadd.f32 %v3114_v55, %v687_v19 }
 0x225   :  { %v724_v32 = vmax.f32 %v708_v28, 0.0  ;;  %v725_v34 = vmax.f32 %v709_v29, 0.0 }
 0x226   :  { %v634_v20 = vpop.f32.mrf.mxu0  ;;  %v663_v21 = vpop.f32.mrf.mxu1 }
 0x227   :  { %v635_v24 = vadd.f32 %v634_v20, %v496_v5  ;;  %v664_v25 = vadd.f32 %v663_v21, %v525_v4  ;;  %v535_v10 = vpop.f32.mrf.mxu3  ;;  %v506_v11 = vpop.f32.mrf.mxu2 }
 0x229   :  { %v688_v26 = vmul.f32 %v3103_v46, %v635_v24  ;;  %v689_v27 = vmul.f32 %v3105_v48, %v664_v25 }
 0x22b   :  { %v710_v30 = vadd.f32 %v3111_v53, %v688_v26  ;;  %v711_v31 = vadd.f32 %v3114_v55, %v689_v27 }
 0x22d   :  { %v726_v33 = vmax.f32 %v710_v30, 0.0  ;;  %v727_v35 = vmax.f32 %v711_v31, 0.0 }
 0x22e   :  { %v637_v36 = vpop.f32.mrf.mxu0  ;;  %v666_v37 = vpop.f32.mrf.mxu1 }
 0x22f   :  { %v738_v38 = vpack.c.bf16 %v726_v33, %v724_v32  ;;  %v739_v39 = vpack.c.bf16 %v727_v35, %v725_v34  ;;  %v638_v42 = vadd.f32 %v637_v36, %v499_v23  ;;  %v667_v43 = vadd.f32 %v666_v37, %v528_v22  ;;  %v2416_v34 = vld [vmem:[#allocation5 + $0x20] sm:$0xff]  ;;  %v2415_v36 = vld [vmem:[#allocation5 + $0x18] sm:$0xff] }
 0x230   :  { %v2424_v35 = vld [vmem:[#allocation5 + $0x60] sm:$0xff]  ;;  %v2423_v37 = vld [vmem:[#allocation5 + $0x58] sm:$0xff] }
 0x231   :  { %983 = vmatmul.bf16.gmra.mxu0 %v738_v38  ;;  %1012 = vmatmul.bf16.gmra.mxu1 %v739_v39  ;;  %v690_v44 = vmul.f32 %v3103_v46, %v638_v42  ;;  %v691_v45 = vmul.f32 %v3105_v48, %v667_v43  ;;  %v2412_v42 = vld [vmem:[#allocation5] sm:$0xff] }
 0x232   :  { %v2420_v43 = vld [vmem:[#allocation5 + $0x40] sm:$0xff] }
 0x233   :  { %v712_v56 = vadd.f32 %v3111_v53, %v690_v44  ;;  %v713_v57 = vadd.f32 %v3114_v55, %v691_v45 }
 0x235   :  { %v728_v62 = vmax.f32 %v712_v56, 0.0  ;;  %v729_v2 = vmax.f32 %v713_v57, 0.0 }
 0x236   :  { %v639_v47 = vpop.f32.mrf.mxu0  ;;  %v668_v49 = vpop.f32.mrf.mxu1 }
 0x237   :  { %v640_v50 = vadd.f32 %v639_v47, %v501_v41  ;;  %v669_v51 = vadd.f32 %v668_v49, %v530_v40  ;;  %v2413_v40 = vld [vmem:[#allocation5 + $0x8] sm:$0xff] }
 0x238   :  { %v2421_v41 = vld [vmem:[#allocation5 + $0x48] sm:$0xff] }
 0x239   :  { %v692_v52 = vmul.f32 %v3103_v46, %v640_v50  ;;  %v693_v54 = vmul.f32 %v3105_v48, %v669_v51 }
 0x23b   :  { %v714_v60 = vadd.f32 %v3111_v53, %v692_v52  ;;  %v715_v61 = vadd.f32 %v3114_v55, %v693_v54 }
 0x23d   :  { %v730_v1 = vmax.f32 %v714_v60, 0.0  ;;  %v731_v3 = vmax.f32 %v715_v61, 0.0  ;;  %v2459_v60 = vld [vmem:[%s3312_s14 + $0x38] sm:$0xff]  ;;  %v2458_v61 = vld [vmem:[%s3312_s14 + $0x30] sm:$0xff] }
 0x23e   :  { %v642_v4 = vpop.f32.mrf.mxu0  ;;  %v671_v5 = vpop.f32.mrf.mxu1  ;;  %1331 = vmatpush.bf16.msrb.mxu1 %v2459_v60 }
 0x23f   :  { %v740_v6 = vpack.c.bf16 %v730_v1, %v728_v62  ;;  %v741_v7 = vpack.c.bf16 %v731_v3, %v729_v2  ;;  %v643_v8 = vadd.f32 %v642_v4, %v504_v59  ;;  %v672_v9 = vadd.f32 %v671_v5, %v533_v58  ;;  %v2457_v2 = vld [vmem:[%s3312_s14 + $0x28] sm:$0xff] }
 0x241   :  { %988 = vmatmul.bf16.gmra.mxu0 %v740_v6  ;;  %1017 = vmatmul.bf16.gmra.mxu1 %v741_v7  ;;  %v694_v16 = vmul.f32 %v3103_v46, %v643_v8  ;;  %v695_v17 = vmul.f32 %v3105_v48, %v672_v9 }
 0x242   :  { %1332 = vmatpush.bf16.msrb.mxu1 %v2458_v61 }
 0x243   :  { %v716_v22 = vadd.f32 %v3111_v53, %v694_v16  ;;  %v717_v25 = vadd.f32 %v3114_v55, %v695_v17  ;;  %v2456_v17 = vld [vmem:[%s3312_s14 + $0x20] sm:$0xff] }
 0x245   :  { %v732_v28 = vmax.f32 %v716_v22, 0.0  ;;  %v733_v30 = vmax.f32 %v717_v25, 0.0  ;;  %v2453_v22 = vld [vmem:[%s3312_s14 + $0x8] sm:$0xff] }
 0x246   :  { %v644_v18 = vpop.f32.mrf.mxu0  ;;  %v673_v19 = vpop.f32.mrf.mxu1  ;;  %1333 = vmatpush.bf16.msrb.mxu1 %v2457_v2 }
 0x247   :  { %v645_v20 = vadd.f32 %v644_v18, %v506_v11  ;;  %v674_v21 = vadd.f32 %v673_v19, %v535_v10  ;;  %v2455_v18 = vld [vmem:[%s3312_s14 + $0x18] sm:$0xff]  ;;  %v2454_v19 = vld [vmem:[%s3312_s14 + $0x10] sm:$0xff] }
 0x249   :  { %v696_v23 = vmul.f32 %v3103_v46, %v645_v20  ;;  %v697_v24 = vmul.f32 %v3105_v48, %v674_v21  ;;  %v2419_v46 = vld [vmem:[#allocation5 + $0x38] sm:$0xff] }
 0x24a   :  { %v2427_v48 = vld [vmem:[#allocation5 + $0x78] sm:$0xff]  ;;  %1334 = vmatpush.bf16.msrb.mxu1 %v2456_v17 }
 0x24b   :  { %v718_v26 = vadd.f32 %v3111_v53, %v696_v23  ;;  %v719_v27 = vadd.f32 %v3114_v55, %v697_v24  ;;  %v2418_v53 = vld [vmem:[#allocation5 + $0x30] sm:$0xff]  ;;  %v2452_v23 = vld [vmem:[%s3312_s14] sm:$0xff] }
 0x24c   :  { %v2426_v55 = vld [vmem:[#allocation5 + $0x70] sm:$0xff] }
 0x24d   :  { %v734_v29 = vmax.f32 %v718_v26, 0.0  ;;  %v735_v31 = vmax.f32 %v719_v27, 0.0 }
 0x24e   :  { %1335 = vmatpush.bf16.msrb.mxu1 %v2455_v18 }
 0x24f   :  { %v742_v32 = vpack.c.bf16 %v734_v29, %v732_v28  ;;  %v743_v33 = vpack.c.bf16 %v735_v31, %v733_v30 }
 0x251   :  { %748 = vmatpush.bf16.msra.mxu2 %v742_v32  ;;  %777 = vmatpush.bf16.msrb.mxu3 %v743_v33 }
 0x252   :  { %993 = vmatmul.bf16.gmra.mxu0 %v742_v32  ;;  %1022 = vmatmul.bf16.gmra.mxu1 %v743_v33  ;;  %v3197_v33 = vld [vmem:[%s3353_s11] ss:$0 sm:$0xff]  ;;  %s2748_s11 = smov [#allocation15]  }
 0x253   :  { %1336 = vmatpush.bf16.msrb.mxu1 %v2454_v19  ;;  %s1885_s14 = sshll.u32 %s2748_s11, 4  ;;  %s1886_s14 = int_to_ptr.vmem [resolvable:$true] %s1885_s14 }
 0x255   :  { %749 = vmatpush.bf16.msra.mxu2 %v740_v6  ;;  %778 = vmatpush.bf16.msrb.mxu3 %v741_v7 }
 0x257   :  { %1337 = vmatpush.bf16.msrb.mxu1 %v2453_v22 }
 0x259   :  { %750 = vmatpush.bf16.msra.mxu2 %v738_v38  ;;  %779 = vmatpush.bf16.msrb.mxu3 %v739_v39  ;;  %v2414_v38 = vld [vmem:[#allocation5 + $0x10] sm:$0xff] }
 0x25a   :  { %v2422_v39 = vld [vmem:[#allocation5 + $0x50] sm:$0xff] }
 0x25b   :  { %1338 = vmatpush.bf16.msrb.mxu1 %v2452_v23 }
 0x25d   :  { %751 = vmatpush.bf16.msra.mxu2 %v3122_v12  ;;  %780 = vmatpush.bf16.msrb.mxu3 %v3124_v15  ;;  %v2417_v12 = vld [vmem:[#allocation5 + $0x28] sm:$0xff] }
 0x25e   :  { %v2425_v15 = vld [vmem:[#allocation5 + $0x68] sm:$0xff] }
 0x260   :  { %2077 = vmatmul.msk.bf16.vlgmr.msra.gmra.mxu2 %vm322_vm1, %v2974_v63  ;;  %2081 = vmatmul.msk.bf16.vlgmr.msrb.gmra.mxu3 %vm322_vm1, %v2974_v63 }
 0x261   :  { %1124 = vmatpush.bf16.msrb.mxu2 %v2419_v46  ;;  %1153 = vmatpush.bf16.msra.mxu3 %v2427_v48 }
 0x265   :  { %1125 = vmatpush.bf16.msrb.mxu2 %v2418_v53  ;;  %1154 = vmatpush.bf16.msra.mxu3 %v2426_v55 }
 0x269   :  { %1126 = vmatpush.bf16.msrb.mxu2 %v2417_v12  ;;  %1155 = vmatpush.bf16.msra.mxu3 %v2425_v15  ;;  %v3203_v12 = vld [vmem:[%s3354_s1] ss:$0 sm:$0xff]  ;;  %s1887_s1 = sshll.u32 %s3326_s28, 4  ;;  %s1888_s1 = int_to_ptr.hbm [resolvable:$true] %s1887_s1 }
 0x26d   :  { %1127 = vmatpush.bf16.msrb.mxu2 %v2416_v34  ;;  %1156 = vmatpush.bf16.msra.mxu3 %v2424_v35 }
 0x270   :  { %2078 = vmatmul.msk.bf16.gmra.mxu2 %vm322_vm1, %v2990_v13  ;;  %2082 = vmatmul.msk.bf16.gmra.mxu3 %vm322_vm1, %v2990_v13 }
 0x271   :  { %1128 = vmatpush.bf16.msrb.mxu2 %v2415_v36  ;;  %1157 = vmatpush.bf16.msra.mxu3 %v2423_v37 }
 0x275   :  { %1129 = vmatpush.bf16.msrb.mxu2 %v2414_v38  ;;  %1158 = vmatpush.bf16.msra.mxu3 %v2422_v39 }
 0x279   :  { %1130 = vmatpush.bf16.msrb.mxu2 %v2413_v40  ;;  %1159 = vmatpush.bf16.msra.mxu3 %v2421_v41 }
 0x27d   :  { %1131 = vmatpush.bf16.msrb.mxu2 %v2412_v42  ;;  %1160 = vmatpush.bf16.msra.mxu3 %v2420_v43 }
 0x280   :  { %2079 = vmatmul.msk.bf16.gmra.mxu2 %vm322_vm1, %v2979_v0  ;;  %2083 = vmatmul.msk.bf16.gmra.mxu3 %vm322_vm1, %v2979_v0 }
 0x290   :  { %2080 = vmatmul.msk.bf16.gmra.mxu2 %vm322_vm1, %v2995_v14  ;;  %2084 = vmatmul.msk.bf16.gmra.mxu3 %vm322_vm1, %v2995_v14 }
 0x29e   :  { %v979_v20 = vpop.f32.mrf.mxu0  ;;  %v1008_v21 = vpop.f32.mrf.mxu1 }
 0x29f   :  { %v1009_v26 = vadd.f32 %v1008_v21, %v979_v20 }
 0x2a6   :  { %v981_v24 = vpop.f32.mrf.mxu0  ;;  %v1010_v25 = vpop.f32.mrf.mxu1 }
 0x2a7   :  { %v1011_v46 = vadd.f32 %v1010_v25, %v981_v24 }
 0x2ae   :  { %v984_v29 = vpop.f32.mrf.mxu0  ;;  %v1013_v30 = vpop.f32.mrf.mxu1 }
 0x2af   :  { %v1014_v39 = vadd.f32 %v1013_v30, %v984_v29 }
 0x2b6   :  { %v986_v34 = vpop.f32.mrf.mxu0  ;;  %v1015_v35 = vpop.f32.mrf.mxu1 }
 0x2e3   :  { %v753_v44 = vpop.f32.mrf.mxu2  ;;  %v782_v45 = vpop.f32.mrf.mxu3 }
 0x2eb   :  { %v755_v47 = vpop.f32.mrf.mxu2  ;;  %v784_v49 = vpop.f32.mrf.mxu3 }
 0x2ec   :  { %v802_v50 = vpack.c.bf16 %v755_v47, %v753_v44  ;;  %v803_v51 = vpack.c.bf16 %v784_v49, %v782_v45  ;;  %v989_v49 = vpop.f32.mrf.mxu0 }
 0x2ee   :  { %1132 = vmatmul.bf16.vlgmr.msrb.gmra.mxu2 %v802_v50  ;;  %1161 = vmatmul.bf16.vlgmr.msra.gmra.mxu3 %v803_v51  ;;  %v1018_v50 = vpop.f32.mrf.mxu1 }
 0x2f3   :  { %v758_v52 = vpop.f32.mrf.mxu2  ;;  %v787_v54 = vpop.f32.mrf.mxu3 }
 0x2f6   :  { %v1020_v2 = vpop.f32.mrf.mxu1 }
 0x2fb   :  { %v760_v56 = vpop.f32.mrf.mxu2  ;;  %v789_v57 = vpop.f32.mrf.mxu3 }
 0x2fc   :  { %v804_v58 = vpack.c.bf16 %v760_v56, %v758_v52  ;;  %v805_v59 = vpack.c.bf16 %v789_v57, %v787_v54  ;;  %v1016_v52 = vadd.f32 %v1015_v35, %v986_v34 }
 0x2fe   :  { %1137 = vmatmul.bf16.gmra.mxu2 %v804_v58  ;;  %1166 = vmatmul.bf16.gmra.mxu3 %v805_v59  ;;  %v1023_v21 = vpop.f32.mrf.mxu1 }
 0x303   :  { %v763_v62 = vpop.f32.mrf.mxu2  ;;  %v792_v1 = vpop.f32.mrf.mxu3 }
 0x30b   :  { %v765_v3 = vpop.f32.mrf.mxu2  ;;  %v794_v4 = vpop.f32.mrf.mxu3 }
 0x30c   :  { %v806_v5 = vpack.c.bf16 %v765_v3, %v763_v62  ;;  %v807_v6 = vpack.c.bf16 %v794_v4, %v792_v1  ;;  %v1019_v62 = vadd.f32 %v1018_v50, %v989_v49  ;;  %v991_v1 = vpop.f32.mrf.mxu0 }
 0x30e   :  { %1142 = vmatmul.bf16.gmra.mxu2 %v806_v5  ;;  %1171 = vmatmul.bf16.gmra.mxu3 %v807_v6 }
 0x313   :  { %v768_v7 = vpop.f32.mrf.mxu2  ;;  %v797_v8 = vpop.f32.mrf.mxu3 }
 0x314   :  { %v994_v20 = vpop.f32.mrf.mxu0 }
 0x315   :  { %v1024_v25 = vadd.f32 %v1023_v21, %v994_v20 }
 0x31b   :  { %v770_v9 = vpop.f32.mrf.mxu2  ;;  %v799_v10 = vpop.f32.mrf.mxu3 }
 0x31c   :  { %v808_v11 = vpack.c.bf16 %v770_v9, %v768_v7  ;;  %v809_v16 = vpack.c.bf16 %v799_v10, %v797_v8 }
 0x31e   :  { %1147 = vmatmul.bf16.gmra.mxu2 %v808_v11  ;;  %1176 = vmatmul.bf16.gmra.mxu3 %v809_v16  ;;  %v1021_v11 = vadd.f32 %v1020_v2, %v991_v1  ;;  %v2462_v1 = vld [vmem:[#allocation8 + $0x10] sm:$0xff]  ;;  %v2461_v2 = vld [vmem:[#allocation8 + $0x8] sm:$0xff] }
 0x371   :  { %v1133_v27 = vpop.f32.mrf.mxu2  ;;  %v1162_v28 = vpop.f32.mrf.mxu3 }
 0x372   :  { %v1134_v31 = vadd.f32 %v1133_v27, %v1009_v26 }
 0x374   :  { %v1163_v32 = vadd.f32 %v1162_v28, %v1134_v31 }
 0x376   :  { %v1186_v55 = vmul.f32 %v3197_v33, %v1163_v32 }
 0x378   :  { %v1198_v37 = vadd.f32 %v3203_v12, %v1186_v55 }
 0x379   :  { %v1135_v48 = vpop.f32.mrf.mxu2  ;;  %v1164_v53 = vpop.f32.mrf.mxu3 }
 0x37a   :  { %v1136_v15 = vadd.f32 %v1135_v48, %v1011_v46  ;;  %v1206_v43 = vmax.f32 %v1198_v37, 0.0  ;;  %v996_v46 = vpop.f32.mrf.mxu0  ;;  %v1025_v48 = vpop.f32.mrf.mxu1 }
 0x37b   :  { %v1026_v55 = vadd.f32 %v1025_v48, %v996_v46 }
 0x37c   :  { %v1165_v36 = vadd.f32 %v1164_v53, %v1136_v15 }
 0x37e   :  { %v1187_v38 = vmul.f32 %v3197_v33, %v1165_v36 }
 0x380   :  { %v1199_v40 = vadd.f32 %v3203_v12, %v1187_v38 }
 0x381   :  { %v1138_v41 = vpop.f32.mrf.mxu2  ;;  %v1167_v42 = vpop.f32.mrf.mxu3 }
 0x382   :  { %v1207_v44 = vmax.f32 %v1199_v40, 0.0  ;;  %v1139_v45 = vadd.f32 %v1138_v41, %v1014_v39 }
 0x384   :  { %v1214_v47 = vpack.c.bf16 %v1207_v44, %v1206_v43  ;;  %v1168_v51 = vadd.f32 %v1167_v42, %v1139_v45  ;;  %v2445_v44 = vld [vmem:[%s3311_s13 + $0x8] sm:$0xff]  ;;  %v2444_v45 = vld [vmem:[%s3311_s13] sm:$0xff] }
 0x386   :  { %1339 = vmatmul.bf16.vlgmr.msrb.gmra.mxu1 %v1214_v47  ;;  %v1188_v57 = vmul.f32 %v3197_v33, %v1168_v51 }
 0x388   :  { %v1200_v61 = vadd.f32 %v3203_v12, %v1188_v57 }
 0x389   :  { %v1140_v54 = vpop.f32.mrf.mxu2  ;;  %v1169_v56 = vpop.f32.mrf.mxu3 }
 0x38a   :  { %v1141_v58 = vadd.f32 %v1140_v54, %v1016_v52  ;;  %v1208_v7 = vmax.f32 %v1200_v61, 0.0 }
 0x38c   :  { %v1170_v59 = vadd.f32 %v1169_v56, %v1141_v58 }
 0x38e   :  { %v1189_v60 = vmul.f32 %v3197_v33, %v1170_v59 }
 0x390   :  { %v1201_v3 = vadd.f32 %v3203_v12, %v1189_v60 }
 0x391   :  { %v1143_v4 = vpop.f32.mrf.mxu2  ;;  %v1172_v5 = vpop.f32.mrf.mxu3 }
 0x392   :  { %v1144_v6 = vadd.f32 %v1143_v4, %v1019_v62  ;;  %v1209_v8 = vmax.f32 %v1201_v3, 0.0  ;;  %v2463_v62 = vld [vmem:[#allocation8 + $0x18] sm:$0xff]  ;;  %v2460_v3 = vld [vmem:[#allocation8] sm:$0xff] }
 0x393   :  { %1521 = vmatpush.bf16.msrb.mxu3 %v2463_v62 }
 0x394   :  { %v1215_v9 = vpack.c.bf16 %v1209_v8, %v1208_v7  ;;  %v1173_v10 = vadd.f32 %v1172_v5, %v1144_v6  ;;  %v2500_v8 = vld [vmem:[%s3313_s15] ss:$0 sm:$0xff] }
 0x396   :  { %1344 = vmatmul.bf16.gmra.mxu1 %v1215_v9  ;;  %v1190_v18 = vmul.f32 %v3197_v33, %v1173_v10 }
 0x397   :  { %1522 = vmatpush.bf16.msrb.mxu3 %v2462_v1  ;;  %v2503_v1 = vld [vmem:[%s3317_s19] ss:$0 sm:$0xff] }
 0x398   :  { %v1202_v23 = vadd.f32 %v3203_v12, %v1190_v18 }
 0x399   :  { %v1145_v16 = vpop.f32.mrf.mxu2  ;;  %v1174_v17 = vpop.f32.mrf.mxu3 }
 0x39a   :  { %v1146_v19 = vadd.f32 %v1145_v16, %v1021_v11  ;;  %v1210_v29 = vmax.f32 %v1202_v23, 0.0  ;;  %v2501_v11 = vld [vmem:[%s3314_s16] ss:$0 sm:$0xff] }
 0x39b   :  { %1523 = vmatpush.bf16.msrb.mxu3 %v2461_v2 }
 0x39c   :  { %v1175_v22 = vadd.f32 %v1174_v17, %v1146_v19 }
 0x39e   :  { %v1191_v24 = vmul.f32 %v3197_v33, %v1175_v22 }
 0x39f   :  { %1524 = vmatpush.bf16.msrb.mxu3 %v2460_v3 }
 0x3a0   :  { %v1203_v26 = vadd.f32 %v3203_v12, %v1191_v24 }
 0x3a1   :  { %v1148_v27 = vpop.f32.mrf.mxu2  ;;  %v1177_v28 = vpop.f32.mrf.mxu3 }
 0x3a2   :  { %v1211_v30 = vmax.f32 %v1203_v26, 0.0  ;;  %v1149_v31 = vadd.f32 %v1148_v27, %v1024_v25 }
 0x3a4   :  { %v1216_v32 = vpack.c.bf16 %v1211_v30, %v1210_v29  ;;  %v1178_v53 = vadd.f32 %v1177_v28, %v1149_v31 }
 0x3a6   :  { %1349 = vmatmul.bf16.gmra.mxu1 %v1216_v32  ;;  %v1192_v34 = vmul.f32 %v3197_v33, %v1178_v53 }
 0x3a8   :  { %v1204_v38 = vadd.f32 %v3203_v12, %v1192_v34 }
 0x3a9   :  { %v1150_v15 = vpop.f32.mrf.mxu2  ;;  %v1179_v36 = vpop.f32.mrf.mxu3 }
 0x3aa   :  { %v1151_v35 = vadd.f32 %v1150_v15, %v1026_v55  ;;  %v1212_v41 = vmax.f32 %v1204_v38, 0.0 }
 0x3ac   :  { %v1180_v37 = vadd.f32 %v1179_v36, %v1151_v35 }
 0x3ae   :  { %v1193_v39 = vmul.f32 %v3197_v33, %v1180_v37  ;;  %v2451_v33 = vld [vmem:[%s3311_s13 + $0x38] sm:$0xff] }
 0x3af   :  { %1408 = vmatpush.bf16.msra.mxu2 %v2451_v33 }
 0x3b0   :  { %v1205_v40 = vadd.f32 %v3203_v12, %v1193_v39  ;;  %v2450_v12 = vld [vmem:[%s3311_s13 + $0x30] sm:$0xff] }
 0x3b2   :  { %v1213_v42 = vmax.f32 %v1205_v40, 0.0 }
 0x3b3   :  { %1409 = vmatpush.bf16.msra.mxu2 %v2450_v12 }
 0x3b4   :  { %v1217_v43 = vpack.c.bf16 %v1213_v42, %v1212_v41 }
 0x3b6   :  { %1222 = vmatpush.bf16.msrb.mxu0 %v1217_v43  ;;  %1354 = vmatmul.bf16.gmra.mxu1 %v1217_v43 }
 0x3ba   :  { %1223 = vmatpush.bf16.msrb.mxu0 %v1216_v32 }
 0x3be   :  { %1224 = vmatpush.bf16.msrb.mxu0 %v1215_v9 }
 0x3c2   :  { %1225 = vmatpush.bf16.msrb.mxu0 %v1214_v47 }
 0x3c5   :  { %2213 = vmatmul.msk.bf16.vlgmr.msrb.gmra.mxu0 %vm322_vm1, %v2974_v63  ;;  %v2449_v63 = vld [vmem:[%s3311_s13 + $0x28] sm:$0xff] }
 0x3c6   :  { %1410 = vmatpush.bf16.msra.mxu2 %v2449_v63 }
 0x3d5   :  { %2214 = vmatmul.msk.bf16.gmra.mxu0 %vm322_vm1, %v2990_v13  ;;  %v2447_v13 = vld [vmem:[%s3311_s13 + $0x18] sm:$0xff] }
 0x3e5   :  { %2215 = vmatmul.msk.bf16.gmra.mxu0 %vm322_vm1, %v2979_v0  ;;  %v2448_v0 = vld [vmem:[%s3311_s13 + $0x20] sm:$0xff] }
 0x3e6   :  { %1411 = vmatpush.bf16.msra.mxu2 %v2448_v0 }
 0x3ea   :  { %1412 = vmatpush.bf16.msra.mxu2 %v2447_v13 }
 0x3f5   :  { %2216 = vmatmul.msk.bf16.gmra.mxu0 %vm322_vm1, %v2995_v14  ;;  %v2446_v14 = vld [vmem:[%s3311_s13 + $0x10] sm:$0xff] }
 0x3f6   :  { %1413 = vmatpush.bf16.msra.mxu2 %v2446_v14 }
 0x3fa   :  { %1414 = vmatpush.bf16.msra.mxu2 %v2445_v44 }
 0x3fe   :  { %1415 = vmatpush.bf16.msra.mxu2 %v2444_v45 }
 0x403   :  { %v1340_v4 = vpop.f32.mrf.mxu1 }
 0x40b   :  { %v1342_v5 = vpop.f32.mrf.mxu1 }
 0x413   :  { %v1345_v9 = vpop.f32.mrf.mxu1 }
 0x41b   :  { %v1347_v23 = vpop.f32.mrf.mxu1 }
 0x423   :  { %v1350_v30 = vpop.f32.mrf.mxu1 }
 0x42b   :  { %v1352_v35 = vpop.f32.mrf.mxu1 }
 0x433   :  { %v1355_v42 = vpop.f32.mrf.mxu1 }
 0x43b   :  { %v1357_v14 = vpop.f32.mrf.mxu1 }
 0x442   :  { %v1227_v47 = vpop.f32.mrf.mxu0 }
 0x44a   :  { %v1229_v49 = vpop.f32.mrf.mxu0 }
 0x44b   :  { %v1247_v50 = vpack.c.bf16 %v1229_v49, %v1227_v47 }
 0x44d   :  { %1416 = vmatmul.bf16.vlgmr.msra.gmra.mxu2 %v1247_v50 }
 0x452   :  { %v1232_v51 = vpop.f32.mrf.mxu0 }
 0x45a   :  { %v1234_v52 = vpop.f32.mrf.mxu0 }
 0x45b   :  { %v1248_v54 = vpack.c.bf16 %v1234_v52, %v1232_v51 }
 0x45d   :  { %1421 = vmatmul.bf16.gmra.mxu2 %v1248_v54 }
 0x462   :  { %v1237_v56 = vpop.f32.mrf.mxu0 }
 0x46a   :  { %v1239_v57 = vpop.f32.mrf.mxu0 }
 0x46b   :  { %v1249_v58 = vpack.c.bf16 %v1239_v57, %v1237_v56  ;;  %v2467_v56 = vld [vmem:[#allocation10 + $0x18] sm:$0xff]  ;;  %v2466_v57 = vld [vmem:[#allocation10 + $0x10] sm:$0xff] }
 0x46c   :  { %1630 = vmatpush.bf16.msra.mxu0 %v2467_v56 }
 0x46d   :  { %1426 = vmatmul.bf16.gmra.mxu2 %v1249_v58  ;;  %v2465_v58 = vld [vmem:[#allocation10 + $0x8] sm:$0xff] }
 0x470   :  { %1631 = vmatpush.bf16.msra.mxu0 %v2466_v57  ;;  %v2479_v57 = vld [vmem:[#allocation13 + $0x18] sm:$0xff] }
 0x471   :  { %1857 = vmatpush.bf16.msra.mxu3 %v2479_v57 }
 0x472   :  { %v1242_v59 = vpop.f32.mrf.mxu0 }
 0x474   :  { %1632 = vmatpush.bf16.msra.mxu0 %v2465_v58 }
 0x47a   :  { %v1244_v60 = vpop.f32.mrf.mxu0 }
 0x47b   :  { %v1250_v61 = vpack.c.bf16 %v1244_v60, %v1242_v59  ;;  %v2464_v59 = vld [vmem:[#allocation10] sm:$0xff] }
 0x47c   :  { %1633 = vmatpush.bf16.msra.mxu0 %v2464_v59 }
 0x47d   :  { %1431 = vmatmul.bf16.gmra.mxu2 %v1250_v61  ;;  %v2502_v61 = vld [vmem:[%s3316_s18] ss:$0 sm:$0xff] }
 0x4d0   :  { %v1417_v6 = vpop.f32.mrf.mxu2 }
 0x4d1   :  { %v1418_v7 = vadd.f32 %v1417_v6, %v1340_v4 }
 0x4d3   :  { %v1441_v10 = vmul.f32 %v2500_v8, %v1418_v7 }
 0x4d5   :  { %v1453_v18 = vadd.f32 %v2501_v11, %v1441_v10 }
 0x4d7   :  { %v1461_v21 = vmax.f32 %v1453_v18, 0.0 }
 0x4d8   :  { %v1419_v16 = vpop.f32.mrf.mxu2 }
 0x4d9   :  { %v1420_v17 = vadd.f32 %v1419_v16, %v1342_v5 }
 0x4db   :  { %v1442_v19 = vmul.f32 %v2500_v8, %v1420_v17 }
 0x4dd   :  { %v1454_v20 = vadd.f32 %v2501_v11, %v1442_v19 }
 0x4df   :  { %v1462_v22 = vmax.f32 %v1454_v20, 0.0 }
 0x4e0   :  { %v1422_v24 = vpop.f32.mrf.mxu2 }
 0x4e1   :  { %v1469_v25 = vpack.c.bf16 %v1462_v22, %v1461_v21  ;;  %v1423_v26 = vadd.f32 %v1422_v24, %v1345_v9 }
 0x4e3   :  { %2297 = vmatmul.msk.bf16.vlgmr.msrb.gmra.mxu3 %vm322_vm1, %v1469_v25  ;;  %v1443_v27 = vmul.f32 %v2500_v8, %v1423_v26 }
 0x4e5   :  { %v1455_v31 = vadd.f32 %v2501_v11, %v1443_v27 }
 0x4e7   :  { %v1463_v48 = vmax.f32 %v1455_v31, 0.0 }
 0x4e8   :  { %v1424_v28 = vpop.f32.mrf.mxu2 }
 0x4e9   :  { %v1425_v29 = vadd.f32 %v1424_v28, %v1347_v23 }
 0x4eb   :  { %v1444_v32 = vmul.f32 %v2500_v8, %v1425_v29 }
 0x4ed   :  { %v1456_v46 = vadd.f32 %v2501_v11, %v1444_v32  ;;  %v2475_v32 = vld [vmem:[#allocation11 + $0x38] sm:$0xff] }
 0x4ee   :  { %1759 = vmatpush.bf16.msra.mxu1 %v2475_v32 }
 0x4ef   :  { %v1464_v53 = vmax.f32 %v1456_v46, 0.0  ;;  %v2474_v46 = vld [vmem:[#allocation11 + $0x30] sm:$0xff] }
 0x4f0   :  { %v1427_v55 = vpop.f32.mrf.mxu2 }
 0x4f1   :  { %v1470_v15 = vpack.c.bf16 %v1464_v53, %v1463_v48  ;;  %v1428_v34 = vadd.f32 %v1427_v55, %v1350_v30  ;;  %v2473_v53 = vld [vmem:[#allocation11 + $0x28] sm:$0xff] }
 0x4f2   :  { %1760 = vmatpush.bf16.msra.mxu1 %v2474_v46 }
 0x4f3   :  { %2298 = vmatmul.msk.bf16.gmra.mxu3 %vm322_vm1, %v1470_v15  ;;  %v1445_v36 = vmul.f32 %v2500_v8, %v1428_v34 }
 0x4f5   :  { %v1457_v39 = vadd.f32 %v2501_v11, %v1445_v36 }
 0x4f6   :  { %1761 = vmatpush.bf16.msra.mxu1 %v2473_v53 }
 0x4f7   :  { %v1465_v43 = vmax.f32 %v1457_v39, 0.0 }
 0x4f8   :  { %v1429_v37 = vpop.f32.mrf.mxu2 }
 0x4f9   :  { %v1430_v38 = vadd.f32 %v1429_v37, %v1352_v35  ;;  %v2472_v35 = vld [vmem:[#allocation11 + $0x20] sm:$0xff] }
 0x4fa   :  { %1762 = vmatpush.bf16.msra.mxu1 %v2472_v35 }
 0x4fb   :  { %v1446_v40 = vmul.f32 %v2500_v8, %v1430_v38 }
 0x4fd   :  { %v1458_v41 = vadd.f32 %v2501_v11, %v1446_v40  ;;  %v1796_v40 = vld [vmem:[%s3355_s17] sm:$0x1] }
 0x4ff   :  { %v1466_v33 = vmax.f32 %v1458_v41, 0.0  ;;  %v2471_v41 = vld [vmem:[#allocation11 + $0x18] sm:$0xff] }
 0x500   :  { %v1432_v12 = vpop.f32.mrf.mxu2  ;;  %1763 = vmatpush.bf16.msra.mxu1 %v2471_v41 }
 0x501   :  { %v1471_v63 = vpack.c.bf16 %v1466_v33, %v1465_v43  ;;  %v1433_v0 = vadd.f32 %v1432_v12, %v1355_v42  ;;  %v2470_v42 = vld [vmem:[#allocation11 + $0x10] sm:$0xff]  ;;  %v2469_v43 = vld [vmem:[#allocation11 + $0x8] sm:$0xff]  ;;  %v2468_v33 = vld [vmem:[#allocation11] sm:$0xff] }
 0x503   :  { %2299 = vmatmul.msk.bf16.gmra.mxu3 %vm322_vm1, %v1471_v63  ;;  %v1447_v13 = vmul.f32 %v2500_v8, %v1433_v0  ;;  %v2504_v63 = vld [vmem:[%s3319_s21] ss:$0 sm:$0xff] }
 0x504   :  { %1764 = vmatpush.bf16.msra.mxu1 %v2470_v42 }
 0x505   :  { %v1459_v47 = vadd.f32 %v2501_v11, %v1447_v13  ;;  %v2505_v13 = vld [vmem:[%s3320_s22] ss:$0 sm:$0xff] }
 0x507   :  { %v1467_v51 = vmax.f32 %v1459_v47, 0.0 }
 0x508   :  { %v1434_v44 = vpop.f32.mrf.mxu2  ;;  %1765 = vmatpush.bf16.msra.mxu1 %v2469_v43  ;;  %v2507_v43 = vld [vmem:[%s3324_s26] ss:$0 sm:$0xff] }
 0x509   :  { %v1435_v45 = vadd.f32 %v1434_v44, %v1357_v14 }
 0x50b   :  { %v1448_v49 = vmul.f32 %v2500_v8, %v1435_v45 }
 0x50c   :  { %1766 = vmatpush.bf16.msra.mxu1 %v2468_v33 }
 0x50d   :  { %v1460_v50 = vadd.f32 %v2501_v11, %v1448_v49 }
 0x50f   :  { %v1468_v52 = vmax.f32 %v1460_v50, 0.0 }
 0x511   :  { %v1472_v54 = vpack.c.bf16 %v1468_v52, %v1467_v51 }
 0x513   :  { %2300 = vmatmul.msk.bf16.gmra.mxu3 %vm322_vm1, %v1472_v54 }
 0x566   :  { %v1526_v60 = vpop.f32.mrf.mxu3 }
 0x567   :  { %v1550_v62 = vmul.f32 %v2502_v61, %v1526_v60 }
 0x569   :  { %v1562_v3 = vadd.f32 %v2503_v1, %v1550_v62 }
 0x56b   :  { %v1570_v6 = vmax.f32 %v1562_v3, 0.0 }
 0x56e   :  { %v1528_v2 = vpop.f32.mrf.mxu3 }
 0x56f   :  { %v1551_v4 = vmul.f32 %v2502_v61, %v1528_v2 }
 0x571   :  { %v1563_v5 = vadd.f32 %v2503_v1, %v1551_v4  ;;  %v2477_v4 = vld [vmem:[#allocation13 + $0x8] sm:$0xff] }
 0x573   :  { %v1571_v7 = vmax.f32 %v1563_v5, 0.0  ;;  %v2476_v5 = vld [vmem:[#allocation13] sm:$0xff] }
 0x575   :  { %v1578_v8 = vpack.c.bf16 %v1571_v7, %v1570_v6 }
 0x576   :  { %v1531_v9 = vpop.f32.mrf.mxu3 }
 0x577   :  { %2317 = vmatmul.msk.bf16.vlgmr.msra.gmra.mxu0 %vm322_vm1, %v1578_v8  ;;  %v1552_v10 = vmul.f32 %v2502_v61, %v1531_v9 }
 0x579   :  { %v1564_v16 = vadd.f32 %v2503_v1, %v1552_v10 }
 0x57b   :  { %v1572_v19 = vmax.f32 %v1564_v16, 0.0 }
 0x57e   :  { %v1533_v11 = vpop.f32.mrf.mxu3 }
 0x57f   :  { %v1553_v17 = vmul.f32 %v2502_v61, %v1533_v11 }
 0x581   :  { %v1565_v18 = vadd.f32 %v2503_v1, %v1553_v17 }
 0x583   :  { %v1573_v20 = vmax.f32 %v1565_v18, 0.0 }
 0x585   :  { %v1579_v21 = vpack.c.bf16 %v1573_v20, %v1572_v19 }
 0x586   :  { %v1536_v22 = vpop.f32.mrf.mxu3 }
 0x587   :  { %2318 = vmatmul.msk.bf16.gmra.mxu0 %vm322_vm1, %v1579_v21  ;;  %v1554_v23 = vmul.f32 %v2502_v61, %v1536_v22 }
 0x589   :  { %v1566_v25 = vadd.f32 %v2503_v1, %v1554_v23 }
 0x58b   :  { %v1574_v28 = vmax.f32 %v1566_v25, 0.0 }
 0x58e   :  { %v1538_v24 = vpop.f32.mrf.mxu3 }
 0x58f   :  { %v1555_v26 = vmul.f32 %v2502_v61, %v1538_v24 }
 0x591   :  { %v1567_v27 = vadd.f32 %v2503_v1, %v1555_v26 }
 0x593   :  { %v1575_v29 = vmax.f32 %v1567_v27, 0.0 }
 0x595   :  { %v1580_v30 = vpack.c.bf16 %v1575_v29, %v1574_v28 }
 0x596   :  { %v1541_v31 = vpop.f32.mrf.mxu3 }
 0x597   :  { %2319 = vmatmul.msk.bf16.gmra.mxu0 %vm322_vm1, %v1580_v30  ;;  %v1556_v48 = vmul.f32 %v2502_v61, %v1541_v31 }
 0x599   :  { %v1568_v15 = vadd.f32 %v2503_v1, %v1556_v48 }
 0x59b   :  { %v1576_v37 = vmax.f32 %v1568_v15, 0.0 }
 0x59e   :  { %v1543_v55 = vpop.f32.mrf.mxu3 }
 0x59f   :  { %v1557_v34 = vmul.f32 %v2502_v61, %v1543_v55  ;;  %v2478_v61 = vld [vmem:[#allocation13 + $0x10] sm:$0xff] }
 0x5a0   :  { %1858 = vmatpush.bf16.msra.mxu3 %v2478_v61 }
 0x5a1   :  { %v1569_v36 = vadd.f32 %v2503_v1, %v1557_v34 }
 0x5a3   :  { %v1577_v38 = vmax.f32 %v1569_v36, 0.0 }
 0x5a4   :  { %1859 = vmatpush.bf16.msra.mxu3 %v2477_v4 }
 0x5a5   :  { %v1581_v39 = vpack.c.bf16 %v1577_v38, %v1576_v37 }
 0x5a7   :  { %2320 = vmatmul.msk.bf16.gmra.mxu0 %vm322_vm1, %v1581_v39  ;;  %1804 = vmatpush.bf16.msrb.mxu2 %v1581_v39 }
 0x5a8   :  { %1860 = vmatpush.bf16.msra.mxu3 %v2476_v5 }
 0x5ab   :  { %1805 = vmatpush.bf16.msrb.mxu2 %v1580_v30  ;;  %v2506_v30 = vld [vmem:[%s3322_s24] ss:$0 sm:$0xff]  ;;  %s2747_s24 = smov [#allocation14]  }
 0x5ac   :  { %s1871_s2 = sshll.u32 %s2747_s24, 4  ;;  %s1872_s2 = int_to_ptr.vmem [resolvable:$true] %s1871_s2 }
 0x5af   :  { %1806 = vmatpush.bf16.msrb.mxu2 %v1579_v21 }
 0x5b3   :  { %1807 = vmatpush.bf16.msrb.mxu2 %v1578_v8 }
 0x5b6   :  { %2353 = vmatmul.msk.bf16.vlgmr.msrb.gmra.mxu2 %vm322_vm1, %v1796_v40 }
 0x5f4   :  { %v1635_v12 = vpop.f32.mrf.mxu0 }
 0x5f5   :  { %v1659_v0 = vmul.f32 %v2504_v63, %v1635_v12 }
 0x5f7   :  { %v1671_v44 = vadd.f32 %v2505_v13, %v1659_v0 }
 0x5f9   :  { %v1679_v49 = vmax.f32 %v1671_v44, 0.0 }
 0x5fc   :  { %v1637_v14 = vpop.f32.mrf.mxu0 }
 0x5fd   :  { %v1660_v45 = vmul.f32 %v2504_v63, %v1637_v14 }
 0x5ff   :  { %v1672_v47 = vadd.f32 %v2505_v13, %v1660_v45 }
 0x601   :  { %v1680_v50 = vmax.f32 %v1672_v47, 0.0 }
 0x603   :  { %v1687_v51 = vpack.c.bf16 %v1680_v50, %v1679_v49 }
 0x604   :  { %v1640_v52 = vpop.f32.mrf.mxu0 }
 0x605   :  { %1767 = vmatmul.bf16.vlgmr.msra.gmra.mxu1 %v1687_v51  ;;  %v1661_v54 = vmul.f32 %v2504_v63, %v1640_v52 }
 0x607   :  { %v1673_v58 = vadd.f32 %v2505_v13, %v1661_v54 }
 0x609   :  { %v1681_v62 = vmax.f32 %v1673_v58, 0.0 }
 0x60c   :  { %v1642_v56 = vpop.f32.mrf.mxu0 }
 0x60d   :  { %v1662_v59 = vmul.f32 %v2504_v63, %v1642_v56 }
 0x60f   :  { %v1674_v60 = vadd.f32 %v2505_v13, %v1662_v59 }
 0x611   :  { %v1682_v1 = vmax.f32 %v1674_v60, 0.0 }
 0x613   :  { %v1688_v2 = vpack.c.bf16 %v1682_v1, %v1681_v62 }
 0x614   :  { %v1645_v3 = vpop.f32.mrf.mxu0 }
 0x615   :  { %1772 = vmatmul.bf16.gmra.mxu1 %v1688_v2  ;;  %v1663_v6 = vmul.f32 %v2504_v63, %v1645_v3 }
 0x617   :  { %v1675_v8 = vadd.f32 %v2505_v13, %v1663_v6 }
 0x619   :  { %v1683_v11 = vmax.f32 %v1675_v8, 0.0 }
 0x61c   :  { %v1647_v7 = vpop.f32.mrf.mxu0 }
 0x61d   :  { %v1664_v9 = vmul.f32 %v2504_v63, %v1647_v7 }
 0x61f   :  { %v1676_v10 = vadd.f32 %v2505_v13, %v1664_v9 }
 0x621   :  { %v1684_v16 = vmax.f32 %v1676_v10, 0.0 }
 0x623   :  { %v1689_v17 = vpack.c.bf16 %v1684_v16, %v1683_v11 }
 0x624   :  { %v1650_v18 = vpop.f32.mrf.mxu0 }
 0x625   :  { %1777 = vmatmul.bf16.gmra.mxu1 %v1689_v17  ;;  %v1665_v19 = vmul.f32 %v2504_v63, %v1650_v18 }
 0x627   :  { %v1677_v21 = vadd.f32 %v2505_v13, %v1665_v19 }
 0x629   :  { %v1685_v24 = vmax.f32 %v1677_v21, 0.0 }
 0x62c   :  { %v1652_v20 = vpop.f32.mrf.mxu0 }
 0x62d   :  { %v1666_v22 = vmul.f32 %v2504_v63, %v1652_v20 }
 0x62f   :  { %v1678_v23 = vadd.f32 %v2505_v13, %v1666_v22 }
 0x631   :  { %v1686_v25 = vmax.f32 %v1678_v23, 0.0 }
 0x633   :  { %v1690_v26 = vpack.c.bf16 %v1686_v25, %v1685_v24 }
 0x635   :  { %1782 = vmatmul.bf16.gmra.mxu1 %v1690_v26 }
 0x639   :  { %v1809_v27 = vpop.f32.mrf.mxu2 }
 0x63a   :  { %v1813_v28 = vpack.c.bf16 %v1809_v27, %v1809_v27 }
 0x63c   :  { %2370 = vmatmul.msk.bf16.vlgmr.msra.gmra.mxu3 %vm322_vm1, %v1813_v28 }
 0x641   :  { %v1811_v29 = vpop.f32.mrf.mxu2 }
 0x682   :  { %v1768_v31 = vpop.f32.mrf.mxu1 }
 0x683   :  { %v1769_v32 = vadd.f32 %v2506_v30, %v1768_v31 }
 0x685   :  { %1788 = vst [vmem:[#allocation14] sm:$0xff] %v1769_v32 }
 0x68a   :  { %v1770_v46 = vpop.f32.mrf.mxu1 }
 0x68b   :  { %v1771_v48 = vadd.f32 %v2506_v30, %v1770_v46 }
 0x68d   :  { %1789 = vst [vmem:[#allocation14 + $0x8] sm:$0xff] %v1771_v48 }
 0x692   :  { %v1773_v53 = vpop.f32.mrf.mxu1 }
 0x693   :  { %v1774_v55 = vadd.f32 %v2506_v30, %v1773_v53 }
 0x695   :  { %1790 = vst [vmem:[#allocation14 + $0x10] sm:$0xff] %v1774_v55 }
 0x69a   :  { %v1775_v15 = vpop.f32.mrf.mxu1 }
 0x69b   :  { %v1776_v34 = vadd.f32 %v2506_v30, %v1775_v15 }
 0x69d   :  { %1791 = vst [vmem:[#allocation14 + $0x18] sm:$0xff] %v1776_v34 }
 0x6a2   :  { %v1778_v35 = vpop.f32.mrf.mxu1 }
 0x6a3   :  { %v1779_v36 = vadd.f32 %v2506_v30, %v1778_v35 }
 0x6a5   :  { %1792 = vst [vmem:[#allocation14 + $0x20] sm:$0xff] %v1779_v36 }
 0x6aa   :  { %v1780_v37 = vpop.f32.mrf.mxu1 }
 0x6ab   :  { %v1781_v38 = vadd.f32 %v2506_v30, %v1780_v37 }
 0x6ad   :  { %1793 = vst [vmem:[#allocation14 + $0x28] sm:$0xff] %v1781_v38 }
 0x6b2   :  { %v1783_v39 = vpop.f32.mrf.mxu1 }
 0x6b3   :  { %v1784_v40 = vadd.f32 %v2506_v30, %v1783_v39 }
 0x6b5   :  { %1794 = vst [vmem:[#allocation14 + $0x30] sm:$0xff] %v1784_v40 }
 0x6ba   :  { %v1785_v41 = vpop.f32.mrf.mxu1 }
 0x6bb   :  { %v1786_v42 = vadd.f32 %v2506_v30, %v1785_v41 }
 0x6bd   :  { %1795 = vst [vmem:[#allocation14 + $0x38] sm:$0xff] %v1786_v42 }
 0x6be   :  { %1879 = dma.vmem_to_hbm [thread:$0]  %s1872_s2, 1024, %s1874_s30, [#allocation4], %s2742_s6, %s2742_s6, %s2743_s7  }
 0x6bf   :  { %v1862_v33 = vpop.f32.mrf.mxu3 }
 0x6c0   :  { %v1863_v12 = vadd.f32 %v2507_v43, %v1862_v33 }
 0x6c2   :  { %1866 = vst [vmem:[#allocation15] sm:$0x3] %v1863_v12 }
 0x6c3   :  { %1890 = dma.vmem_to_hbm [thread:$0]  %s1886_s14, 32, %s1888_s1, [#allocation16]  }
 0x6c7   :  { %v1864_v63 = vpop.f32.mrf.mxu3 }
 0x6c8   :  { %2732 = dma.done.wait [#allocation4], 1024  }
 0x6c9   :  { %2733 = vsyncadd [#allocation4], 4294966272 }
 0x6ca   :  { %2734 = dma.done.wait [#allocation16], 32  }
 0x6cb   :  { %2735 = vsyncadd [#allocation16], 4294967264 }
 0x6cc   :  { %1899 = vsyncpa [#allocation3], 1 }
 0x6cd   :  { %1900 = vsyncpa [#allocation6], 1 }
 0x6ce   :  { %1901 = vsyncpa [#allocation9], 1 }
 0x6cf   :  { %1902 = vsyncpa [#allocation12], 1 }
 0x6d0   :  { %1903 = vsyncpa [#allocation4], 1 }
 0x6d1   :  { %1904 = vsyncpa [#allocation16], 1 }

</bundles_post_ra>
